<compile_context>
chip_gen: v7x
topology: tpu7x:2x2x1
jax: 0.10.0
libtpu: 0.0.40
codegen_flags: <defaults>
</compile_context>

<pallas_src>
import functools

import jax
import jax.numpy as jnp
from jax.experimental import pallas as pl
from jax.experimental.pallas import tpu as pltpu

EPS = 1e-5
LEAKY_SLOPE = 0.01
MATMUL_DTYPE = jnp.bfloat16     # MXU-native inputs; accum / norm math in f32


def _compiler_params():
    # Both grid axes are independent ("parallel" => megacore-shardable on v7x);
    # explicit VMEM limit sized to fit v7x's 64 MiB physical VMEM.
    return pltpu.CompilerParams(
        dimension_semantics=("parallel", "parallel"),
        vmem_limit_bytes=48 * 1024 * 1024)


# ----------------------------- Pallas kernels ------------------------------ #

def _upsample_kernel(x_ref, w_ref, b_ref, o_ref):
    """ConvTranspose3d k=2,s=2 as one matmul onto 8 interleaved sub-voxels.

    x_ref: (Cin, TM) bf16, w_ref: (8*Cout, Cin) bf16, b_ref: (8*Cout, 1) f32.
    """
    acc = jnp.dot(w_ref[...], x_ref[...], preferred_element_type=jnp.float32)
    o_ref[...] = (acc + b_ref[...]).astype(o_ref.dtype)


def _make_conv_plane_kernel(n_parts, has_bias, Wp, Lp):
    """3x3x3 conv (pad=1) for one output depth plane, concat fused in.

    Ref order:
      for each part: 3 depth-shifted views, each (Cp, Lf) bf16
      for each part: weights (3, Cout, 9*Cp) bf16
      [bias (Cout, 1) f32]   mask (1, Lp) f32
      outputs: conv (Cout, Lp) f32, sum (Cout, 1) f32, sumsq (Cout, 1) f32
    """
    offs = [kh * Wp + kw for kh in range(3) for kw in range(3)]

    def kernel(*refs):
        i = 0
        views = []
        for _ in range(n_parts):
            views.append(refs[i:i + 3]); i += 3
        weights = []
        for _ in range(n_parts):
            weights.append(refs[i]); i += 1
        if has_bias:
            b_ref = refs[i]; i += 1
        mask_ref = refs[i]; i += 1
        conv_ref, sum_ref, sq_ref = refs[i], refs[i + 1], refs[i + 2]

        cout = conv_ref.shape[0]
        acc = jnp.zeros((cout, Lp), jnp.float32)
        if has_bias:
            acc = acc + b_ref[...]
        for p in range(n_parts):
            w_ref = weights[p]
            for kd in range(3):
                v = views[p][kd][...]                          # (Cp, Lf) bf16
                rhs = jnp.concatenate(                          # (9*Cp, Lp)
                    [v[:, o:o + Lp] for o in offs], axis=0)
                acc = acc + jnp.dot(w_ref[kd], rhs,
                                    preferred_element_type=jnp.float32)
        conv = acc * mask_ref[...]          # zero the padded-border columns
        conv_ref[...] = conv
        sum_ref[...] = jnp.sum(conv, axis=1, keepdims=True)
        sq_ref[...] = jnp.sum(conv * conv, axis=1, keepdims=True)

    return kernel


def _norm_act_kernel(x_ref, scale_ref, shift_ref, mask_ref, o_ref, *, relu):
    """x * scale + shift -> ReLU / LeakyReLU(0.01) -> re-zero border columns."""
    z = x_ref[...] * scale_ref[...] + shift_ref[...]
    if relu:
        z = jnp.maximum(z, 0.0)
    else:
        z = jnp.where(z >= 0, z, LEAKY_SLOPE * z)
    o_ref[...] = (z * mask_ref[...]).astype(o_ref.dtype)


def _norm_res_act_kernel(x_ref, scale_ref, shift_ref, res_ref, mask_ref, o_ref):
    """InstanceNorm(conv2) + residual + LeakyReLU(0.01)."""
    z = (x_ref[...] * scale_ref[...] + shift_ref[...]
         + res_ref[...].astype(jnp.float32))
    z = jnp.where(z >= 0, z, LEAKY_SLOPE * z)
    o_ref[...] = (z * mask_ref[...]).astype(o_ref.dtype)


# ------------------------------- JAX glue ---------------------------------- #

def _valid_mask(H, W):
    """(1, (H+2)*(W+2)) f32 mask, 1 at real voxels, 0 at the H/W padding."""
    Hp, Wp = H + 2, W + 2
    hp = jnp.arange(Hp)
    wp = jnp.arange(Wp)
    m = ((hp >= 1) & (hp <= H))[:, None] & ((wp >= 1) & (wp <= W))[None, :]
    return m.reshape(1, Hp * Wp).astype(jnp.float32)


def _w3d_to_tap(w):
    """(Cout, Cp, 3, 3, 3) -> (3_kd, Cout, 9*Cp), columns ordered (kh, kw, ci)."""
    cout, cp = w.shape[0], w.shape[1]
    return jnp.transpose(w, (2, 0, 3, 4, 1)).reshape(3, cout, 9 * cp).astype(
        MATMUL_DTYPE)


def _pad_flat_ncdhw(x, H, W):
    """(N, C, D, H, W) -> (N, D+2, C, Lf) bf16, spatially zero-padded and with
    the (H+2)*(W+2) plane flattened onto the lane axis plus a (Wp+1) halo."""
    N, C, D, _, _ = x.shape
    Hp, Wp = H + 2, W + 2
    xp = jnp.pad(x, ((0, 0), (0, 0), (1, 1), (1, 1), (1, 1)))
    xp = jnp.transpose(xp, (0, 2, 1, 3, 4)).reshape(N, D + 2, C, Hp * Wp)
    xp = jnp.pad(xp, ((0, 0), (0, 0), (0, 0), (Wp + 1, Wp + 1)))
    return xp.astype(MATMUL_DTYPE)


def _pad_flat_planes(z, Wp):
    """(N, D, C, Lp) with zeroed borders -> (N, D+2, C, Lf)."""
    return jnp.pad(z, ((0, 0), (1, 1), (0, 0), (Wp + 1, Wp + 1)))


def transp_conv_k2s2(x_ncdhw, weight, bias):
    """ConvTranspose3d, kernel=stride=2, pad=0.  weight: (Cin, Cout, 2, 2, 2)."""
    N, Cin, D0, H0, W0 = x_ncdhw.shape
    Cout = weight.shape[1]
    M0 = D0 * H0 * W0
    xf = x_ncdhw.reshape(N, Cin, M0).astype(MATMUL_DTYPE)
    # rows ordered (kd, kh, kw, co)
    w2 = jnp.transpose(weight, (2, 3, 4, 1, 0)).reshape(8 * Cout, Cin).astype(
        MATMUL_DTYPE)
    b2 = jnp.tile(bias, 8).reshape(8 * Cout, 1).astype(jnp.float32)

    tm = M0 if M0 <= 1024 else 1024
    y8 = pl.pallas_call(
        _upsample_kernel,
        out_shape=jax.ShapeDtypeStruct((N, 8 * Cout, M0), MATMUL_DTYPE),
        grid=(N, pl.cdiv(M0, tm)),
        in_specs=[pl.BlockSpec((None, Cin, tm), lambda n, m: (n, 0, m)),
                  pl.BlockSpec((8 * Cout, Cin), lambda n, m: (0, 0)),
                  pl.BlockSpec((8 * Cout, 1), lambda n, m: (0, 0))],
        out_specs=pl.BlockSpec((None, 8 * Cout, tm), lambda n, m: (n, 0, m)),
        compiler_params=_compiler_params(),
    )(xf, w2, b2)

    # Interleave the 8 sub-voxels: (N,2,2,2,Cout,D0,H0,W0) -> (N,Cout,2D,2H,2W)
    # TODO(synk): fold this stride-2 interleave into the out_spec instead of an
    # XLA transpose of the upsampled tensor.
    y8 = y8.reshape(N, 2, 2, 2, Cout, D0, H0, W0)
    return jnp.transpose(y8, (0, 4, 5, 1, 6, 2, 7, 3)).reshape(
        N, Cout, 2 * D0, 2 * H0, 2 * W0)


def _conv3x3_planes(parts, part_weights, bias, mask, H, W):
    """Fused 3x3x3 conv (stride 1, pad 1) over channel-concatenated `parts`.

    parts:        list of (N, D+2, Cp, Lf) bf16 padded-flat activations
    part_weights: list of (3, Cout, 9*Cp) bf16
    Returns conv (N, D, Cout, Lp) f32 plus per-plane per-channel sum / sumsq
    partials (N, D, Cout, 1) f32 each.
    """
    N, Dp, _, Lf = parts[0].shape
    D = Dp - 2
    Wp = W + 2
    Lp = (H + 2) * Wp
    Cout = part_weights[0].shape[1]
    has_bias = bias is not None

    in_specs, args = [], []
    for xp in parts:
        Cp = xp.shape[2]
        for kd in range(3):
            in_specs.append(pl.BlockSpec(
                (None, None, Cp, Lf), lambda n, d, kd=kd: (n, d + kd, 0, 0)))
            args.append(xp)
    for w in part_weights:
        in_specs.append(pl.BlockSpec(w.shape, lambda n, d: (0, 0, 0)))
        args.append(w)
    if has_bias:
        in_specs.append(pl.BlockSpec((Cout, 1), lambda n, d: (0, 0)))
        args.append(bias.reshape(Cout, 1).astype(jnp.float32))
    in_specs.append(pl.BlockSpec((1, Lp), lambda n, d: (0, 0)))
    args.append(mask)

    kernel = _make_conv_plane_kernel(len(parts), has_bias, Wp, Lp)
    conv, ssum, ssq = pl.pallas_call(
        kernel,
        grid=(N, D),
        out_shape=(jax.ShapeDtypeStruct((N, D, Cout, Lp), jnp.float32),
                   jax.ShapeDtypeStruct((N, D, Cout, 1), jnp.float32),
                   jax.ShapeDtypeStruct((N, D, Cout, 1), jnp.float32)),
        in_specs=in_specs,
        out_specs=(
            pl.BlockSpec((None, None, Cout, Lp), lambda n, d: (n, d, 0, 0)),
            pl.BlockSpec((None, None, Cout, 1), lambda n, d: (n, d, 0, 0)),
            pl.BlockSpec((None, None, Cout, 1), lambda n, d: (n, d, 0, 0))),
        compiler_params=_compiler_params(),
    )(*args)
    return conv, ssum, ssq


def _norm_act(conv, scale, shift, mask, *, relu, residual=None,
              out_dtype=MATMUL_DTYPE):
    """Tiled normalize + activation (+ residual) pass."""
    N, D, C, Lp = conv.shape
    in_specs = [pl.BlockSpec((None, None, C, Lp), lambda n, d: (n, d, 0, 0)),
                pl.BlockSpec((None, C, 1), lambda n, d: (n, 0, 0)),
                pl.BlockSpec((None, C, 1), lambda n, d: (n, 0, 0))]
    args = [conv, scale, shift]
    if residual is None:
        kernel = functools.partial(_norm_act_kernel, relu=relu)
    else:
        kernel = _norm_res_act_kernel
        in_specs.append(
            pl.BlockSpec((None, None, C, Lp), lambda n, d: (n, d, 0, 0)))
        args.append(residual)
    in_specs.append(pl.BlockSpec((1, Lp), lambda n, d: (0, 0)))
    args.append(mask)
    return pl.pallas_call(
        kernel,
        grid=(N, D),
        out_shape=jax.ShapeDtypeStruct((N, D, C, Lp), out_dtype),
        in_specs=in_specs,
        out_specs=pl.BlockSpec((None, None, C, Lp), lambda n, d: (n, d, 0, 0)),
        compiler_params=_compiler_params(),
    )(*args)


def _moments(ssum, ssq, axes, count):
    """Reduce per-plane partials to (mean, 1/sqrt(var+eps)); all in f32."""
    s = jnp.sum(ssum, axis=axes)
    q = jnp.sum(ssq, axis=axes)
    mean = s / count
    var = jnp.maximum(q / count - mean * mean, 0.0)     # biased variance
    return mean, jax.lax.rsqrt(var + EPS)


def _bn_scale_shift(ssum, ssq, count, gamma, beta, N):
    mean, inv = _moments(ssum, ssq, (0, 1, 3), count)   # stats over N*D*H*W
    scale = gamma * inv
    shift = beta - mean * scale
    C = scale.shape[0]
    return (jnp.broadcast_to(scale[None, :, None], (N, C, 1)),
            jnp.broadcast_to(shift[None, :, None], (N, C, 1)))


def _in_scale_shift(ssum, ssq, count):
    mean, inv = _moments(ssum, ssq, (1, 3), count)      # per-sample stats
    return inv[..., None], (-mean * inv)[..., None]


def stage_decoder_forward(x0_ncdhw, skip_ncdhw, params):
    """StageDecoder.forward(inp[0], inp[1]).  Inputs / output are NCDHW."""
    x0 = x0_ncdhw.astype(jnp.float32)
    skip = skip_ncdhw.astype(jnp.float32)
    N = x0.shape[0]
    Cout = params["transp_w"].shape[1]

    # 1. transposed conv (k=2, s=2): upsample the deep feature.
    y = transp_conv_k2s2(x0, params["transp_w"], params["transp_b"])
    _, _, D, H, W = y.shape
    Hp, Wp = H + 2, W + 2
    mask = _valid_mask(H, W)

    # 2. [concat fused] Conv3d(k=3,p=1) + BatchNorm (training stats) + ReLU.
    wy, ws = params["cat_w"][:, :Cout], params["cat_w"][:, Cout:]
    conv_c, sum_c, sq_c = _conv3x3_planes(
        [_pad_flat_ncdhw(y, H, W), _pad_flat_ncdhw(skip, H, W)],
        [_w3d_to_tap(wy), _w3d_to_tap(ws)],
        params["cat_b"], mask, H, W)
    scale, shift = _bn_scale_shift(sum_c, sq_c, float(N * D * H * W),
                                   params["bn_gamma"], params["bn_beta"], N)
    z = _norm_act(conv_c, scale, shift, mask, relu=True)        # bf16 planes

    # 3. UnetResBlock conv1 -> InstanceNorm -> LeakyReLU(0.01).
    count_in = float(D * H * W)
    conv1, sum1, sq1 = _conv3x3_planes([_pad_flat_planes(z, Wp)],
                                       [_w3d_to_tap(params["res_w1"])],
                                       None, mask, H, W)
    s1, t1 = _in_scale_shift(sum1, sq1, count_in)
    a = _norm_act(conv1, s1, t1, mask, relu=False)              # bf16 planes

    # 4. conv2 -> InstanceNorm -> (+ residual z) -> LeakyReLU(0.01).
    conv2, sum2, sq2 = _conv3x3_planes([_pad_flat_planes(a, Wp)],
                                       [_w3d_to_tap(params["res_w2"])],
                                       None, mask, H, W)
    s2, t2 = _in_scale_shift(sum2, sq2, count_in)
    out_planes = _norm_act(conv2, s2, t2, mask, relu=False,
                           residual=z, out_dtype=jnp.float32)

    # Strip the H/W plane padding and return NCDHW.
    out = out_planes.reshape(N, D, Cout, Hp, Wp)[:, :, :, 1:H + 1, 1:W + 1]
    return jnp.transpose(out, (0, 2, 1, 3, 4))


def init_params(key, in_channels, out_channels):
    # Deterministic synthetic init (std=0.02 weights, zero biases, BN gamma=1,
    # beta=0 — matching the module's _init_weights / default BN init).
    # self.alpha / self.gamma / self.beta only feed the dead `if False` branch.
    ks = jax.random.split(key, 4)
    mid = 2 * out_channels
    return dict(
        transp_w=0.02 * jax.random.normal(
            ks[0], (in_channels, out_channels, 2, 2, 2), jnp.float32),
        transp_b=jnp.zeros((out_channels,), jnp.float32),
        cat_w=0.02 * jax.random.normal(
            ks[1], (out_channels, mid, 3, 3, 3), jnp.float32),
        cat_b=jnp.zeros((out_channels,), jnp.float32),
        bn_gamma=jnp.ones((out_channels,), jnp.float32),
        bn_beta=jnp.zeros((out_channels,), jnp.float32),
        res_w1=0.02 * jax.random.normal(
            ks[2], (out_channels, out_channels, 3, 3, 3), jnp.float32),
        res_w2=0.02 * jax.random.normal(
            ks[3], (out_channels, out_channels, 3, 3, 3), jnp.float32),
    )


if __name__ == "__main__":
    key = jax.random.PRNGKey(0)
    kx, ks, kp = jax.random.split(key, 3)

    in_channels, out_channels = 8, 4
    N, D0 = 2, 4                      # deep feature spatial = 4^3, skip = 8^3
    x0 = jax.random.normal(kx, (N, in_channels, D0, D0, D0), jnp.float32)
    skip = jax.random.normal(ks, (N, out_channels, 2 * D0, 2 * D0, 2 * D0),
                             jnp.float32)
    params = init_params(kp, in_channels, out_channels)

    fwd = jax.jit(stage_decoder_forward)
    out = fwd(x0, skip, params)
    jax.block_until_ready(out)

    assert out.shape == (N, out_channels, 2 * D0, 2 * D0, 2 * D0), out.shape
    assert bool(jnp.all(jnp.isfinite(out)))
    print("KERNEL_OK")
</pallas_src>

<mosaic_0001>
module attributes {stable_mosaic.version = 11 : i64} {
  func.func @_upsample_kernel(%arg0: i32, %arg1: i32, %arg2: memref<1x8x64xbf16, #tpu.memory_space<vmem>>, %arg3: memref<32x8xbf16, #tpu.memory_space<vmem>>, %arg4: memref<32x1xf32, #tpu.memory_space<vmem>>, %arg5: memref<1x32x64xbf16, #tpu.memory_space<vmem>>) attributes {dimension_semantics = [#tpu.dimension_semantics<parallel>, #tpu.dimension_semantics<parallel>], iteration_bounds = array<i64: 2, 1>, scalar_prefetch = 0 : i64, scratch_operands = 0 : i64, tpu.core_type = #tpu.core_type<tc>, window_params = [{transform_indices = @transform_0, window_bounds = array<i64: 1, 8, 64>}, {pipeline_mode = #tpu.pipeline_mode<synchronous>, transform_indices = @transform_1, window_bounds = array<i64: 32, 8>}, {pipeline_mode = #tpu.pipeline_mode<synchronous>, transform_indices = @transform_2, window_bounds = array<i64: 32, 1>}, {transform_indices = @transform_3, window_bounds = array<i64: 1, 32, 64>}]} {
    %c0 = arith.constant 0 : index
    %c0_0 = arith.constant 0 : index
    %0 = vector.load %arg3[%c0, %c0_0] : memref<32x8xbf16, #tpu.memory_space<vmem>>, vector<32x8xbf16>
    %c0_1 = arith.constant 0 : index
    %c0_2 = arith.constant 0 : index
    %c0_3 = arith.constant 0 : index
    %1 = vector.load %arg2[%c0_1, %c0_2, %c0_3] : memref<1x8x64xbf16, #tpu.memory_space<vmem>>, vector<1x8x64xbf16>
    %2 = vector.shape_cast %1 : vector<1x8x64xbf16> to vector<8x64xbf16>
    %cst = arith.constant dense<0.000000e+00> : vector<32x64xf32>
    %3 = tpu.matmul %0, %2, %cst {dimension_numbers = #tpu.dot_dimension_numbers<[1], [0], [0], [1], [0, 0, 1, 1], [], []>} : vector<32x8xbf16>, vector<8x64xbf16>, vector<32x64xf32> -> vector<32x64xf32>
    %c0_4 = arith.constant 0 : index
    %c0_5 = arith.constant 0 : index
    %4 = vector.load %arg4[%c0_4, %c0_5] : memref<32x1xf32, #tpu.memory_space<vmem>>, vector<32x1xf32>
    %5 = vector.broadcast %4 : vector<32x1xf32> to vector<32x64xf32>
    %6 = arith.addf %3, %5 : vector<32x64xf32>
    %7 = arith.truncf %6 : vector<32x64xf32> to vector<32x64xbf16>
    %c0_6 = arith.constant 0 : index
    %c0_7 = arith.constant 0 : index
    %c0_8 = arith.constant 0 : index
    %8 = vector.load %arg5[%c0_6, %c0_7, %c0_8] : memref<1x32x64xbf16, #tpu.memory_space<vmem>>, vector<1x32x64xbf16>
    %9 = vector.shape_cast %8 : vector<1x32x64xbf16> to vector<32x64xbf16>
    %10 = vector.shape_cast %7 : vector<32x64xbf16> to vector<1x32x64xbf16>
    tpu.vector_store %arg5[%c0_6, %c0_7, %c0_8], %10 {strides = array<i32>} : memref<1x32x64xbf16, #tpu.memory_space<vmem>>, vector<1x32x64xbf16>,
    return
  }
  func.func @transform_0(%arg0: i32, %arg1: i32) -> (i32, i32, i32) {
    %c0_i32 = arith.constant 0 : i32
    %c0_i32_0 = arith.constant 0 : i32
    return %arg0, %c0_i32, %arg1 : i32, i32, i32
  }
  func.func @transform_1(%arg0: i32, %arg1: i32) -> (i32, i32) {
    %c0_i32 = arith.constant 0 : i32
    %c0_i32_0 = arith.constant 0 : i32
    %c0_i32_1 = arith.constant 0 : i32
    return %c0_i32, %c0_i32_0 : i32, i32
  }
  func.func @transform_2(%arg0: i32, %arg1: i32) -> (i32, i32) {
    %c0_i32 = arith.constant 0 : i32
    %c0_i32_0 = arith.constant 0 : i32
    %c0_i32_1 = arith.constant 0 : i32
    return %c0_i32, %c0_i32_0 : i32, i32
  }
  func.func @transform_3(%arg0: i32, %arg1: i32) -> (i32, i32, i32) {
    %c0_i32 = arith.constant 0 : i32
    %c0_i32_0 = arith.constant 0 : i32
    return %arg0, %c0_i32, %arg1 : i32, i32, i32
  }
}

module attributes {stable_mosaic.version = 11 : i64} {
  func.func @kernel(%arg0: i32, %arg1: i32, %arg2: memref<1x1x4x122xbf16, #tpu.memory_space<vmem>>, %arg3: memref<1x1x4x122xbf16, #tpu.memory_space<vmem>>, %arg4: memref<1x1x4x122xbf16, #tpu.memory_space<vmem>>, %arg5: memref<1x1x4x122xbf16, #tpu.memory_space<vmem>>, %arg6: memref<1x1x4x122xbf16, #tpu.memory_space<vmem>>, %arg7: memref<1x1x4x122xbf16, #tpu.memory_space<vmem>>, %arg8: memref<3x4x36xbf16, #tpu.memory_space<vmem>>, %arg9: memref<3x4x36xbf16, #tpu.memory_space<vmem>>, %arg10: memref<4x1xf32, #tpu.memory_space<vmem>>, %arg11: memref<1x100xf32, #tpu.memory_space<vmem>>, %arg12: memref<1x1x4x100xf32, #tpu.memory_space<vmem>>, %arg13: memref<1x1x4x1xf32, #tpu.memory_space<vmem>>, %arg14: memref<1x1x4x1xf32, #tpu.memory_space<vmem>>) attributes {dimension_semantics = [#tpu.dimension_semantics<parallel>, #tpu.dimension_semantics<parallel>], iteration_bounds = array<i64: 2, 8>, scalar_prefetch = 0 : i64, scratch_operands = 0 : i64, tpu.core_type = #tpu.core_type<tc>, window_params = [{transform_indices = @transform_0, window_bounds = array<i64: 1, 1, 4, 122>}, {transform_indices = @transform_1, window_bounds = array<i64: 1, 1, 4, 122>}, {transform_indices = @transform_2, window_bounds = array<i64: 1, 1, 4, 122>}, {transform_indices = @transform_3, window_bounds = array<i64: 1, 1, 4, 122>}, {transform_indices = @transform_4, window_bounds = array<i64: 1, 1, 4, 122>}, {transform_indices = @transform_5, window_bounds = array<i64: 1, 1, 4, 122>}, {pipeline_mode = #tpu.pipeline_mode<synchronous>, transform_indices = @transform_6, window_bounds = array<i64: 3, 4, 36>}, {pipeline_mode = #tpu.pipeline_mode<synchronous>, transform_indices = @transform_7, window_bounds = array<i64: 3, 4, 36>}, {pipeline_mode = #tpu.pipeline_mode<synchronous>, transform_indices = @transform_8, window_bounds = array<i64: 4, 1>}, {pipeline_mode = #tpu.pipeline_mode<synchronous>, transform_indices = @transform_9, window_bounds = array<i64: 1, 100>}, {transform_indices = @transform_10, window_bounds = array<i64: 1, 1, 4, 100>}, {transform_indices = @transform_11, window_bounds = array<i64: 1, 1, 4, 1>}, {transform_indices = @transform_12, window_bounds = array<i64: 1, 1, 4, 1>}]} {
    %cst = arith.constant 0.000000e+00 : f32
    %0 = vector.broadcast %cst : f32 to vector<4x100xf32>
    %c0 = arith.constant 0 : index
    %c0_0 = arith.constant 0 : index
    %1 = vector.load %arg10[%c0, %c0_0] : memref<4x1xf32, #tpu.memory_space<vmem>>, vector<4x1xf32>
    %2 = vector.broadcast %1 : vector<4x1xf32> to vector<4x100xf32>
    %3 = arith.addf %0, %2 : vector<4x100xf32>
    %c0_1 = arith.constant 0 : index
    %c0_2 = arith.constant 0 : index
    %c0_3 = arith.constant 0 : index
    %c0_4 = arith.constant 0 : index
    %4 = vector.load %arg2[%c0_1, %c0_2, %c0_3, %c0_4] : memref<1x1x4x122xbf16, #tpu.memory_space<vmem>>, vector<1x1x4x122xbf16>
    %5 = vector.shape_cast %4 : vector<1x1x4x122xbf16> to vector<4x122xbf16>
    %6 = vector.extract_strided_slice %5 {offsets = [0, 0], sizes = [4, 100], strides = [1, 1]} : vector<4x122xbf16> to vector<4x100xbf16>
    %7 = vector.extract_strided_slice %5 {offsets = [0, 1], sizes = [4, 100], strides = [1, 1]} : vector<4x122xbf16> to vector<4x100xbf16>
    %8 = vector.extract_strided_slice %5 {offsets = [0, 2], sizes = [4, 100], strides = [1, 1]} : vector<4x122xbf16> to vector<4x100xbf16>
    %9 = vector.extract_strided_slice %5 {offsets = [0, 10], sizes = [4, 100], strides = [1, 1]} : vector<4x122xbf16> to vector<4x100xbf16>
    %10 = vector.extract_strided_slice %5 {offsets = [0, 11], sizes = [4, 100], strides = [1, 1]} : vector<4x122xbf16> to vector<4x100xbf16>
    %11 = vector.extract_strided_slice %5 {offsets = [0, 12], sizes = [4, 100], strides = [1, 1]} : vector<4x122xbf16> to vector<4x100xbf16>
    %12 = vector.extract_strided_slice %5 {offsets = [0, 20], sizes = [4, 100], strides = [1, 1]} : vector<4x122xbf16> to vector<4x100xbf16>
    %13 = vector.extract_strided_slice %5 {offsets = [0, 21], sizes = [4, 100], strides = [1, 1]} : vector<4x122xbf16> to vector<4x100xbf16>
    %14 = vector.extract_strided_slice %5 {offsets = [0, 22], sizes = [4, 100], strides = [1, 1]} : vector<4x122xbf16> to vector<4x100xbf16>
    %15 = tpu.concatenate %6, %7, %8, %9, %10, %11, %12, %13, %14 in 0 : vector<4x100xbf16>, vector<4x100xbf16>, vector<4x100xbf16>, vector<4x100xbf16>, vector<4x100xbf16>, vector<4x100xbf16>, vector<4x100xbf16>, vector<4x100xbf16>, vector<4x100xbf16> -> vector<36x100xbf16>
    %c0_5 = arith.constant 0 : index
    %c0_6 = arith.constant 0 : index
    %c0_7 = arith.constant 0 : index
    %16 = vector.load %arg8[%c0_5, %c0_6, %c0_7] : memref<3x4x36xbf16, #tpu.memory_space<vmem>>, vector<1x4x36xbf16>
    %17 = vector.shape_cast %16 : vector<1x4x36xbf16> to vector<4x36xbf16>
    %cst_8 = arith.constant dense<0.000000e+00> : vector<4x100xf32>
    %18 = tpu.matmul %17, %15, %cst_8 {dimension_numbers = #tpu.dot_dimension_numbers<[1], [0], [0], [1], [0, 0, 1, 1], [], []>} : vector<4x36xbf16>, vector<36x100xbf16>, vector<4x100xf32> -> vector<4x100xf32>
    %19 = arith.addf %3, %18 : vector<4x100xf32>
    %c0_9 = arith.constant 0 : index
    %c0_10 = arith.constant 0 : index
    %c0_11 = arith.constant 0 : index
    %c0_12 = arith.constant 0 : index
    %20 = vector.load %arg3[%c0_9, %c0_10, %c0_11, %c0_12] : memref<1x1x4x122xbf16, #tpu.memory_space<vmem>>, vector<1x1x4x122xbf16>
    %21 = vector.shape_cast %20 : vector<1x1x4x122xbf16> to vector<4x122xbf16>
    %22 = vector.extract_strided_slice %21 {offsets = [0, 0], sizes = [4, 100], strides = [1, 1]} : vector<4x122xbf16> to vector<4x100xbf16>
    %23 = vector.extract_strided_slice %21 {offsets = [0, 1], sizes = [4, 100], strides = [1, 1]} : vector<4x122xbf16> to vector<4x100xbf16>
    %24 = vector.extract_strided_slice %21 {offsets = [0, 2], sizes = [4, 100], strides = [1, 1]} : vector<4x122xbf16> to vector<4x100xbf16>
    %25 = vector.extract_strided_slice %21 {offsets = [0, 10], sizes = [4, 100], strides = [1, 1]} : vector<4x122xbf16> to vector<4x100xbf16>
    %26 = vector.extract_strided_slice %21 {offsets = [0, 11], sizes = [4, 100], strides = [1, 1]} : vector<4x122xbf16> to vector<4x100xbf16>
    %27 = vector.extract_strided_slice %21 {offsets = [0, 12], sizes = [4, 100], strides = [1, 1]} : vector<4x122xbf16> to vector<4x100xbf16>
    %28 = vector.extract_strided_slice %21 {offsets = [0, 20], sizes = [4, 100], strides = [1, 1]} : vector<4x122xbf16> to vector<4x100xbf16>
    %29 = vector.extract_strided_slice %21 {offsets = [0, 21], sizes = [4, 100], strides = [1, 1]} : vector<4x122xbf16> to vector<4x100xbf16>
    %30 = vector.extract_strided_slice %21 {offsets = [0, 22], sizes = [4, 100], strides = [1, 1]} : vector<4x122xbf16> to vector<4x100xbf16>
    %31 = tpu.concatenate %22, %23, %24, %25, %26, %27, %28, %29, %30 in 0 : vector<4x100xbf16>, vector<4x100xbf16>, vector<4x100xbf16>, vector<4x100xbf16>, vector<4x100xbf16>, vector<4x100xbf16>, vector<4x100xbf16>, vector<4x100xbf16>, vector<4x100xbf16> -> vector<36x100xbf16>
    %c1 = arith.constant 1 : index
    %c0_13 = arith.constant 0 : index
    %c0_14 = arith.constant 0 : index
    %32 = vector.load %arg8[%c1, %c0_13, %c0_14] : memref<3x4x36xbf16, #tpu.memory_space<vmem>>, vector<1x4x36xbf16>
    %33 = vector.shape_cast %32 : vector<1x4x36xbf16> to vector<4x36xbf16>
    %cst_15 = arith.constant dense<0.000000e+00> : vector<4x100xf32>
    %34 = tpu.matmul %33, %31, %cst_15 {dimension_numbers = #tpu.dot_dimension_numbers<[1], [0], [0], [1], [0, 0, 1, 1], [], []>} : vector<4x36xbf16>, vector<36x100xbf16>, vector<4x100xf32> -> vector<4x100xf32>
    %35 = arith.addf %19, %34 : vector<4x100xf32>
    %c0_16 = arith.constant 0 : index
    %c0_17 = arith.constant 0 : index
    %c0_18 = arith.constant 0 : index
    %c0_19 = arith.constant 0 : index
    %36 = vector.load %arg4[%c0_16, %c0_17, %c0_18, %c0_19] : memref<1x1x4x122xbf16, #tpu.memory_space<vmem>>, vector<1x1x4x122xbf16>
    %37 = vector.shape_cast %36 : vector<1x1x4x122xbf16> to vector<4x122xbf16>
    %38 = vector.extract_strided_slice %37 {offsets = [0, 0], sizes = [4, 100], strides = [1, 1]} : vector<4x122xbf16> to vector<4x100xbf16>
    %39 = vector.extract_strided_slice %37 {offsets = [0, 1], sizes = [4, 100], strides = [1, 1]} : vector<4x122xbf16> to vector<4x100xbf16>
    %40 = vector.extract_strided_slice %37 {offsets = [0, 2], sizes = [4, 100], strides = [1, 1]} : vector<4x122xbf16> to vector<4x100xbf16>
    %41 = vector.extract_strided_slice %37 {offsets = [0, 10], sizes = [4, 100], strides = [1, 1]} : vector<4x122xbf16> to vector<4x100xbf16>
    %42 = vector.extract_strided_slice %37 {offsets = [0, 11], sizes = [4, 100], strides = [1, 1]} : vector<4x122xbf16> to vector<4x100xbf16>
    %43 = vector.extract_strided_slice %37 {offsets = [0, 12], sizes = [4, 100], strides = [1, 1]} : vector<4x122xbf16> to vector<4x100xbf16>
    %44 = vector.extract_strided_slice %37 {offsets = [0, 20], sizes = [4, 100], strides = [1, 1]} : vector<4x122xbf16> to vector<4x100xbf16>
    %45 = vector.extract_strided_slice %37 {offsets = [0, 21], sizes = [4, 100], strides = [1, 1]} : vector<4x122xbf16> to vector<4x100xbf16>
    %46 = vector.extract_strided_slice %37 {offsets = [0, 22], sizes = [4, 100], strides = [1, 1]} : vector<4x122xbf16> to vector<4x100xbf16>
    %47 = tpu.concatenate %38, %39, %40, %41, %42, %43, %44, %45, %46 in 0 : vector<4x100xbf16>, vector<4x100xbf16>, vector<4x100xbf16>, vector<4x100xbf16>, vector<4x100xbf16>, vector<4x100xbf16>, vector<4x100xbf16>, vector<4x100xbf16>, vector<4x100xbf16> -> vector<36x100xbf16>
    %c2 = arith.constant 2 : index
    %c0_20 = arith.constant 0 : index
    %c0_21 = arith.constant 0 : index
    %48 = vector.load %arg8[%c2, %c0_20, %c0_21] : memref<3x4x36xbf16, #tpu.memory_space<vmem>>, vector<1x4x36xbf16>
    %49 = vector.shape_cast %48 : vector<1x4x36xbf16> to vector<4x36xbf16>
    %cst_22 = arith.constant dense<0.000000e+00> : vector<4x100xf32>
    %50 = tpu.matmul %49, %47, %cst_22 {dimension_numbers = #tpu.dot_dimension_numbers<[1], [0], [0], [1], [0, 0, 1, 1], [], []>} : vector<4x36xbf16>, vector<36x100xbf16>, vector<4x100xf32> -> vector<4x100xf32>
    %51 = arith.addf %35, %50 : vector<4x100xf32>
    %c0_23 = arith.constant 0 : index
    %c0_24 = arith.constant 0 : index
    %c0_25 = arith.constant 0 : index
    %c0_26 = arith.constant 0 : index
    %52 = vector.load %arg5[%c0_23, %c0_24, %c0_25, %c0_26] : memref<1x1x4x122xbf16, #tpu.memory_space<vmem>>, vector<1x1x4x122xbf16>
    %53 = vector.shape_cast %52 : vector<1x1x4x122xbf16> to vector<4x122xbf16>
    %54 = vector.extract_strided_slice %53 {offsets = [0, 0], sizes = [4, 100], strides = [1, 1]} : vector<4x122xbf16> to vector<4x100xbf16>
    %55 = vector.extract_strided_slice %53 {offsets = [0, 1], sizes = [4, 100], strides = [1, 1]} : vector<4x122xbf16> to vector<4x100xbf16>
    %56 = vector.extract_strided_slice %53 {offsets = [0, 2], sizes = [4, 100], strides = [1, 1]} : vector<4x122xbf16> to vector<4x100xbf16>
    %57 = vector.extract_strided_slice %53 {offsets = [0, 10], sizes = [4, 100], strides = [1, 1]} : vector<4x122xbf16> to vector<4x100xbf16>
    %58 = vector.extract_strided_slice %53 {offsets = [0, 11], sizes = [4, 100], strides = [1, 1]} : vector<4x122xbf16> to vector<4x100xbf16>
    %59 = vector.extract_strided_slice %53 {offsets = [0, 12], sizes = [4, 100], strides = [1, 1]} : vector<4x122xbf16> to vector<4x100xbf16>
    %60 = vector.extract_strided_slice %53 {offsets = [0, 20], sizes = [4, 100], strides = [1, 1]} : vector<4x122xbf16> to vector<4x100xbf16>
    %61 = vector.extract_strided_slice %53 {offsets = [0, 21], sizes = [4, 100], strides = [1, 1]} : vector<4x122xbf16> to vector<4x100xbf16>
    %62 = vector.extract_strided_slice %53 {offsets = [0, 22], sizes = [4, 100], strides = [1, 1]} : vector<4x122xbf16> to vector<4x100xbf16>
    %63 = tpu.concatenate %54, %55, %56, %57, %58, %59, %60, %61, %62 in 0 : vector<4x100xbf16>, vector<4x100xbf16>, vector<4x100xbf16>, vector<4x100xbf16>, vector<4x100xbf16>, vector<4x100xbf16>, vector<4x100xbf16>, vector<4x100xbf16>, vector<4x100xbf16> -> vector<36x100xbf16>
    %c0_27 = arith.constant 0 : index
    %c0_28 = arith.constant 0 : index
    %c0_29 = arith.constant 0 : index
    %64 = vector.load %arg9[%c0_27, %c0_28, %c0_29] : memref<3x4x36xbf16, #tpu.memory_space<vmem>>, vector<1x4x36xbf16>
    %65 = vector.shape_cast %64 : vector<1x4x36xbf16> to vector<4x36xbf16>
    %cst_30 = arith.constant dense<0.000000e+00> : vector<4x100xf32>
    %66 = tpu.matmul %65, %63, %cst_30 {dimension_numbers = #tpu.dot_dimension_numbers<[1], [0], [0], [1], [0, 0, 1, 1], [], []>} : vector<4x36xbf16>, vector<36x100xbf16>, vector<4x100xf32> -> vector<4x100xf32>
    %67 = arith.addf %51, %66 : vector<4x100xf32>
    %c0_31 = arith.constant 0 : index
    %c0_32 = arith.constant 0 : index
    %c0_33 = arith.constant 0 : index
    %c0_34 = arith.constant 0 : index
    %68 = vector.load %arg6[%c0_31, %c0_32, %c0_33, %c0_34] : memref<1x1x4x122xbf16, #tpu.memory_space<vmem>>, vector<1x1x4x122xbf16>
    %69 = vector.shape_cast %68 : vector<1x1x4x122xbf16> to vector<4x122xbf16>
    %70 = vector.extract_strided_slice %69 {offsets = [0, 0], sizes = [4, 100], strides = [1, 1]} : vector<4x122xbf16> to vector<4x100xbf16>
    %71 = vector.extract_strided_slice %69 {offsets = [0, 1], sizes = [4, 100], strides = [1, 1]} : vector<4x122xbf16> to vector<4x100xbf16>
    %72 = vector.extract_strided_slice %69 {offsets = [0, 2], sizes = [4, 100], strides = [1, 1]} : vector<4x122xbf16> to vector<4x100xbf16>
    %73 = vector.extract_strided_slice %69 {offsets = [0, 10], sizes = [4, 100], strides = [1, 1]} : vector<4x122xbf16> to vector<4x100xbf16>
    %74 = vector.extract_strided_slice %69 {offsets = [0, 11], sizes = [4, 100], strides = [1, 1]} : vector<4x122xbf16> to vector<4x100xbf16>
    %75 = vector.extract_strided_slice %69 {offsets = [0, 12], sizes = [4, 100], strides = [1, 1]} : vector<4x122xbf16> to vector<4x100xbf16>
    %76 = vector.extract_strided_slice %69 {offsets = [0, 20], sizes = [4, 100], strides = [1, 1]} : vector<4x122xbf16> to vector<4x100xbf16>
    %77 = vector.extract_strided_slice %69 {offsets = [0, 21], sizes = [4, 100], strides = [1, 1]} : vector<4x122xbf16> to vector<4x100xbf16>
    %78 = vector.extract_strided_slice %69 {offsets = [0, 22], sizes = [4, 100], strides = [1, 1]} : vector<4x122xbf16> to vector<4x100xbf16>
    %79 = tpu.concatenate %70, %71, %72, %73, %74, %75, %76, %77, %78 in 0 : vector<4x100xbf16>, vector<4x100xbf16>, vector<4x100xbf16>, vector<4x100xbf16>, vector<4x100xbf16>, vector<4x100xbf16>, vector<4x100xbf16>, vector<4x100xbf16>, vector<4x100xbf16> -> vector<36x100xbf16>
    %c1_35 = arith.constant 1 : index
    %c0_36 = arith.constant 0 : index
    %c0_37 = arith.constant 0 : index
    %80 = vector.load %arg9[%c1_35, %c0_36, %c0_37] : memref<3x4x36xbf16, #tpu.memory_space<vmem>>, vector<1x4x36xbf16>
    %81 = vector.shape_cast %80 : vector<1x4x36xbf16> to vector<4x36xbf16>
    %cst_38 = arith.constant dense<0.000000e+00> : vector<4x100xf32>
    %82 = tpu.matmul %81, %79, %cst_38 {dimension_numbers = #tpu.dot_dimension_numbers<[1], [0], [0], [1], [0, 0, 1, 1], [], []>} : vector<4x36xbf16>, vector<36x100xbf16>, vector<4x100xf32> -> vector<4x100xf32>
    %83 = arith.addf %67, %82 : vector<4x100xf32>
    %c0_39 = arith.constant 0 : index
    %c0_40 = arith.constant 0 : index
    %c0_41 = arith.constant 0 : index
    %c0_42 = arith.constant 0 : index
    %84 = vector.load %arg7[%c0_39, %c0_40, %c0_41, %c0_42] : memref<1x1x4x122xbf16, #tpu.memory_space<vmem>>, vector<1x1x4x122xbf16>
    %85 = vector.shape_cast %84 : vector<1x1x4x122xbf16> to vector<4x122xbf16>
    %86 = vector.extract_strided_slice %85 {offsets = [0, 0], sizes = [4, 100], strides = [1, 1]} : vector<4x122xbf16> to vector<4x100xbf16>
    %87 = vector.extract_strided_slice %85 {offsets = [0, 1], sizes = [4, 100], strides = [1, 1]} : vector<4x122xbf16> to vector<4x100xbf16>
    %88 = vector.extract_strided_slice %85 {offsets = [0, 2], sizes = [4, 100], strides = [1, 1]} : vector<4x122xbf16> to vector<4x100xbf16>
    %89 = vector.extract_strided_slice %85 {offsets = [0, 10], sizes = [4, 100], strides = [1, 1]} : vector<4x122xbf16> to vector<4x100xbf16>
    %90 = vector.extract_strided_slice %85 {offsets = [0, 11], sizes = [4, 100], strides = [1, 1]} : vector<4x122xbf16> to vector<4x100xbf16>
    %91 = vector.extract_strided_slice %85 {offsets = [0, 12], sizes = [4, 100], strides = [1, 1]} : vector<4x122xbf16> to vector<4x100xbf16>
    %92 = vector.extract_strided_slice %85 {offsets = [0, 20], sizes = [4, 100], strides = [1, 1]} : vector<4x122xbf16> to vector<4x100xbf16>
    %93 = vector.extract_strided_slice %85 {offsets = [0, 21], sizes = [4, 100], strides = [1, 1]} : vector<4x122xbf16> to vector<4x100xbf16>
    %94 = vector.extract_strided_slice %85 {offsets = [0, 22], sizes = [4, 100], strides = [1, 1]} : vector<4x122xbf16> to vector<4x100xbf16>
    %95 = tpu.concatenate %86, %87, %88, %89, %90, %91, %92, %93, %94 in 0 : vector<4x100xbf16>, vector<4x100xbf16>, vector<4x100xbf16>, vector<4x100xbf16>, vector<4x100xbf16>, vector<4x100xbf16>, vector<4x100xbf16>, vector<4x100xbf16>, vector<4x100xbf16> -> vector<36x100xbf16>
    %c2_43 = arith.constant 2 : index
    %c0_44 = arith.constant 0 : index
    %c0_45 = arith.constant 0 : index
    %96 = vector.load %arg9[%c2_43, %c0_44, %c0_45] : memref<3x4x36xbf16, #tpu.memory_space<vmem>>, vector<1x4x36xbf16>
    %97 = vector.shape_cast %96 : vector<1x4x36xbf16> to vector<4x36xbf16>
    %cst_46 = arith.constant dense<0.000000e+00> : vector<4x100xf32>
    %98 = tpu.matmul %97, %95, %cst_46 {dimension_numbers = #tpu.dot_dimension_numbers<[1], [0], [0], [1], [0, 0, 1, 1], [], []>} : vector<4x36xbf16>, vector<36x100xbf16>, vector<4x100xf32> -> vector<4x100xf32>
    %99 = arith.addf %83, %98 : vector<4x100xf32>
    %c0_47 = arith.constant 0 : index
    %c0_48 = arith.constant 0 : index
    %100 = vector.load %arg11[%c0_47, %c0_48] : memref<1x100xf32, #tpu.memory_space<vmem>>, vector<1x100xf32>
    %101 = vector.broadcast %100 : vector<1x100xf32> to vector<4x100xf32>
    %102 = arith.mulf %99, %101 : vector<4x100xf32>
    %c0_49 = arith.constant 0 : index
    %c0_50 = arith.constant 0 : index
    %c0_51 = arith.constant 0 : index
    %c0_52 = arith.constant 0 : index
    %103 = vector.load %arg12[%c0_49, %c0_50, %c0_51, %c0_52] : memref<1x1x4x100xf32, #tpu.memory_space<vmem>>, vector<1x1x4x100xf32>
    %104 = vector.shape_cast %103 : vector<1x1x4x100xf32> to vector<4x100xf32>
    %105 = vector.shape_cast %102 : vector<4x100xf32> to vector<1x1x4x100xf32>
    tpu.vector_store %arg12[%c0_49, %c0_50, %c0_51, %c0_52], %105 {strides = array<i32>} : memref<1x1x4x100xf32, #tpu.memory_space<vmem>>, vector<1x1x4x100xf32>,
    %cst_53 = arith.constant dense<0.000000e+00> : vector<4xf32>
    %106 = vector.multi_reduction <add>, %102, %cst_53 [1] : vector<4x100xf32> to vector<4xf32>
    %107 = vector.shape_cast %106 : vector<4xf32> to vector<4x1xf32>
    %c0_54 = arith.constant 0 : index
    %c0_55 = arith.constant 0 : index
    %c0_56 = arith.constant 0 : index
    %c0_57 = arith.constant 0 : index
    %108 = vector.load %arg13[%c0_54, %c0_55, %c0_56, %c0_57] : memref<1x1x4x1xf32, #tpu.memory_space<vmem>>, vector<1x1x4x1xf32>
    %109 = vector.shape_cast %108 : vector<1x1x4x1xf32> to vector<4x1xf32>
    %110 = vector.shape_cast %107 : vector<4x1xf32> to vector<1x1x4x1xf32>
    tpu.vector_store %arg13[%c0_54, %c0_55, %c0_56, %c0_57], %110 {strides = array<i32>} : memref<1x1x4x1xf32, #tpu.memory_space<vmem>>, vector<1x1x4x1xf32>,
    %111 = arith.mulf %102, %102 : vector<4x100xf32>
    %cst_58 = arith.constant dense<0.000000e+00> : vector<4xf32>
    %112 = vector.multi_reduction <add>, %111, %cst_58 [1] : vector<4x100xf32> to vector<4xf32>
    %113 = vector.shape_cast %112 : vector<4xf32> to vector<4x1xf32>
    %c0_59 = arith.constant 0 : index
    %c0_60 = arith.constant 0 : index
    %c0_61 = arith.constant 0 : index
    %c0_62 = arith.constant 0 : index
    %114 = vector.load %arg14[%c0_59, %c0_60, %c0_61, %c0_62] : memref<1x1x4x1xf32, #tpu.memory_space<vmem>>, vector<1x1x4x1xf32>
    %115 = vector.shape_cast %114 : vector<1x1x4x1xf32> to vector<4x1xf32>
    %116 = vector.shape_cast %113 : vector<4x1xf32> to vector<1x1x4x1xf32>
    tpu.vector_store %arg14[%c0_59, %c0_60, %c0_61, %c0_62], %116 {strides = array<i32>} : memref<1x1x4x1xf32, #tpu.memory_space<vmem>>, vector<1x1x4x1xf32>,
    return
  }
  func.func @transform_0(%arg0: i32, %arg1: i32) -> (i32, i32, i32, i32) {
    %c0_i32 = arith.constant 0 : i32
    %0 = arith.addi %arg1, %c0_i32 : i32
    %c0_i32_0 = arith.constant 0 : i32
    %c0_i32_1 = arith.constant 0 : i32
    %c0_i32_2 = arith.constant 0 : i32
    return %arg0, %0, %c0_i32_0, %c0_i32_1 : i32, i32, i32, i32
  }
  func.func @transform_1(%arg0: i32, %arg1: i32) -> (i32, i32, i32, i32) {
    %c1_i32 = arith.constant 1 : i32
    %0 = arith.addi %arg1, %c1_i32 : i32
    %c0_i32 = arith.constant 0 : i32
    %c0_i32_0 = arith.constant 0 : i32
    %c0_i32_1 = arith.constant 0 : i32
    return %arg0, %0, %c0_i32, %c0_i32_0 : i32, i32, i32, i32
  }
  func.func @transform_2(%arg0: i32, %arg1: i32) -> (i32, i32, i32, i32) {
    %c2_i32 = arith.constant 2 : i32
    %0 = arith.addi %arg1, %c2_i32 : i32
    %c0_i32 = arith.constant 0 : i32
    %c0_i32_0 = arith.constant 0 : i32
    %c0_i32_1 = arith.constant 0 : i32
    return %arg0, %0, %c0_i32, %c0_i32_0 : i32, i32, i32, i32
  }
  func.func @transform_3(%arg0: i32, %arg1: i32) -> (i32, i32, i32, i32) {
    %c0_i32 = arith.constant 0 : i32
    %0 = arith.addi %arg1, %c0_i32 : i32
    %c0_i32_0 = arith.constant 0 : i32
    %c0_i32_1 = arith.constant 0 : i32
    %c0_i32_2 = arith.constant 0 : i32
    return %arg0, %0, %c0_i32_0, %c0_i32_1 : i32, i32, i32, i32
  }
  func.func @transform_4(%arg0: i32, %arg1: i32) -> (i32, i32, i32, i32) {
    %c1_i32 = arith.constant 1 : i32
    %0 = arith.addi %arg1, %c1_i32 : i32
    %c0_i32 = arith.constant 0 : i32
    %c0_i32_0 = arith.constant 0 : i32
    %c0_i32_1 = arith.constant 0 : i32
    return %arg0, %0, %c0_i32, %c0_i32_0 : i32, i32, i32, i32
  }
  func.func @transform_5(%arg0: i32, %arg1: i32) -> (i32, i32, i32, i32) {
    %c2_i32 = arith.constant 2 : i32
    %0 = arith.addi %arg1, %c2_i32 : i32
    %c0_i32 = arith.constant 0 : i32
    %c0_i32_0 = arith.constant 0 : i32
    %c0_i32_1 = arith.constant 0 : i32
    return %arg0, %0, %c0_i32, %c0_i32_0 : i32, i32, i32, i32
  }
  func.func @transform_6(%arg0: i32, %arg1: i32) -> (i32, i32, i32) {
    %c0_i32 = arith.constant 0 : i32
    %c0_i32_0 = arith.constant 0 : i32
    %c0_i32_1 = arith.constant 0 : i32
    %c0_i32_2 = arith.constant 0 : i32
    return %c0_i32, %c0_i32_0, %c0_i32_1 : i32, i32, i32
  }
  func.func @transform_7(%arg0: i32, %arg1: i32) -> (i32, i32, i32) {
    %c0_i32 = arith.constant 0 : i32
    %c0_i32_0 = arith.constant 0 : i32
    %c0_i32_1 = arith.constant 0 : i32
    %c0_i32_2 = arith.constant 0 : i32
    return %c0_i32, %c0_i32_0, %c0_i32_1 : i32, i32, i32
  }
  func.func @transform_8(%arg0: i32, %arg1: i32) -> (i32, i32) {
    %c0_i32 = arith.constant 0 : i32
    %c0_i32_0 = arith.constant 0 : i32
    %c0_i32_1 = arith.constant 0 : i32
    return %c0_i32, %c0_i32_0 : i32, i32
  }
  func.func @transform_9(%arg0: i32, %arg1: i32) -> (i32, i32) {
    %c0_i32 = arith.constant 0 : i32
    %c0_i32_0 = arith.constant 0 : i32
    %c0_i32_1 = arith.constant 0 : i32
    return %c0_i32, %c0_i32_0 : i32, i32
  }
  func.func @transform_10(%arg0: i32, %arg1: i32) -> (i32, i32, i32, i32) {
    %c0_i32 = arith.constant 0 : i32
    %c0_i32_0 = arith.constant 0 : i32
    %c0_i32_1 = arith.constant 0 : i32
    return %arg0, %arg1, %c0_i32, %c0_i32_0 : i32, i32, i32, i32
  }
  func.func @transform_11(%arg0: i32, %arg1: i32) -> (i32, i32, i32, i32) {
    %c0_i32 = arith.constant 0 : i32
    %c0_i32_0 = arith.constant 0 : i32
    %c0_i32_1 = arith.constant 0 : i32
    return %arg0, %arg1, %c0_i32, %c0_i32_0 : i32, i32, i32, i32
  }
  func.func @transform_12(%arg0: i32, %arg1: i32) -> (i32, i32, i32, i32) {
    %c0_i32 = arith.constant 0 : i32
    %c0_i32_0 = arith.constant 0 : i32
    %c0_i32_1 = arith.constant 0 : i32
    return %arg0, %arg1, %c0_i32, %c0_i32_0 : i32, i32, i32, i32
  }
}

module attributes {stable_mosaic.version = 11 : i64} {
  func.func @kernel(%arg0: i32, %arg1: i32, %arg2: memref<1x1x4x122xbf16, #tpu.memory_space<vmem>>, %arg3: memref<1x1x4x122xbf16, #tpu.memory_space<vmem>>, %arg4: memref<1x1x4x122xbf16, #tpu.memory_space<vmem>>, %arg5: memref<3x4x36xbf16, #tpu.memory_space<vmem>>, %arg6: memref<1x100xf32, #tpu.memory_space<vmem>>, %arg7: memref<1x1x4x100xf32, #tpu.memory_space<vmem>>, %arg8: memref<1x1x4x1xf32, #tpu.memory_space<vmem>>, %arg9: memref<1x1x4x1xf32, #tpu.memory_space<vmem>>) attributes {dimension_semantics = [#tpu.dimension_semantics<parallel>, #tpu.dimension_semantics<parallel>], iteration_bounds = array<i64: 2, 8>, scalar_prefetch = 0 : i64, scratch_operands = 0 : i64, tpu.core_type = #tpu.core_type<tc>, window_params = [{transform_indices = @transform_0, window_bounds = array<i64: 1, 1, 4, 122>}, {transform_indices = @transform_1, window_bounds = array<i64: 1, 1, 4, 122>}, {transform_indices = @transform_2, window_bounds = array<i64: 1, 1, 4, 122>}, {pipeline_mode = #tpu.pipeline_mode<synchronous>, transform_indices = @transform_3, window_bounds = array<i64: 3, 4, 36>}, {pipeline_mode = #tpu.pipeline_mode<synchronous>, transform_indices = @transform_4, window_bounds = array<i64: 1, 100>}, {transform_indices = @transform_5, window_bounds = array<i64: 1, 1, 4, 100>}, {transform_indices = @transform_6, window_bounds = array<i64: 1, 1, 4, 1>}, {transform_indices = @transform_7, window_bounds = array<i64: 1, 1, 4, 1>}]} {
    %cst = arith.constant 0.000000e+00 : f32
    %0 = vector.broadcast %cst : f32 to vector<4x100xf32>
    %c0 = arith.constant 0 : index
    %c0_0 = arith.constant 0 : index
    %c0_1 = arith.constant 0 : index
    %c0_2 = arith.constant 0 : index
    %1 = vector.load %arg2[%c0, %c0_0, %c0_1, %c0_2] : memref<1x1x4x122xbf16, #tpu.memory_space<vmem>>, vector<1x1x4x122xbf16>
    %2 = vector.shape_cast %1 : vector<1x1x4x122xbf16> to vector<4x122xbf16>
    %3 = vector.extract_strided_slice %2 {offsets = [0, 0], sizes = [4, 100], strides = [1, 1]} : vector<4x122xbf16> to vector<4x100xbf16>
    %4 = vector.extract_strided_slice %2 {offsets = [0, 1], sizes = [4, 100], strides = [1, 1]} : vector<4x122xbf16> to vector<4x100xbf16>
    %5 = vector.extract_strided_slice %2 {offsets = [0, 2], sizes = [4, 100], strides = [1, 1]} : vector<4x122xbf16> to vector<4x100xbf16>
    %6 = vector.extract_strided_slice %2 {offsets = [0, 10], sizes = [4, 100], strides = [1, 1]} : vector<4x122xbf16> to vector<4x100xbf16>
    %7 = vector.extract_strided_slice %2 {offsets = [0, 11], sizes = [4, 100], strides = [1, 1]} : vector<4x122xbf16> to vector<4x100xbf16>
    %8 = vector.extract_strided_slice %2 {offsets = [0, 12], sizes = [4, 100], strides = [1, 1]} : vector<4x122xbf16> to vector<4x100xbf16>
    %9 = vector.extract_strided_slice %2 {offsets = [0, 20], sizes = [4, 100], strides = [1, 1]} : vector<4x122xbf16> to vector<4x100xbf16>
    %10 = vector.extract_strided_slice %2 {offsets = [0, 21], sizes = [4, 100], strides = [1, 1]} : vector<4x122xbf16> to vector<4x100xbf16>
    %11 = vector.extract_strided_slice %2 {offsets = [0, 22], sizes = [4, 100], strides = [1, 1]} : vector<4x122xbf16> to vector<4x100xbf16>
    %12 = tpu.concatenate %3, %4, %5, %6, %7, %8, %9, %10, %11 in 0 : vector<4x100xbf16>, vector<4x100xbf16>, vector<4x100xbf16>, vector<4x100xbf16>, vector<4x100xbf16>, vector<4x100xbf16>, vector<4x100xbf16>, vector<4x100xbf16>, vector<4x100xbf16> -> vector<36x100xbf16>
    %c0_3 = arith.constant 0 : index
    %c0_4 = arith.constant 0 : index
    %c0_5 = arith.constant 0 : index
    %13 = vector.load %arg5[%c0_3, %c0_4, %c0_5] : memref<3x4x36xbf16, #tpu.memory_space<vmem>>, vector<1x4x36xbf16>
    %14 = vector.shape_cast %13 : vector<1x4x36xbf16> to vector<4x36xbf16>
    %cst_6 = arith.constant dense<0.000000e+00> : vector<4x100xf32>
    %15 = tpu.matmul %14, %12, %cst_6 {dimension_numbers = #tpu.dot_dimension_numbers<[1], [0], [0], [1], [0, 0, 1, 1], [], []>} : vector<4x36xbf16>, vector<36x100xbf16>, vector<4x100xf32> -> vector<4x100xf32>
    %16 = arith.addf %0, %15 : vector<4x100xf32>
    %c0_7 = arith.constant 0 : index
    %c0_8 = arith.constant 0 : index
    %c0_9 = arith.constant 0 : index
    %c0_10 = arith.constant 0 : index
    %17 = vector.load %arg3[%c0_7, %c0_8, %c0_9, %c0_10] : memref<1x1x4x122xbf16, #tpu.memory_space<vmem>>, vector<1x1x4x122xbf16>
    %18 = vector.shape_cast %17 : vector<1x1x4x122xbf16> to vector<4x122xbf16>
    %19 = vector.extract_strided_slice %18 {offsets = [0, 0], sizes = [4, 100], strides = [1, 1]} : vector<4x122xbf16> to vector<4x100xbf16>
    %20 = vector.extract_strided_slice %18 {offsets = [0, 1], sizes = [4, 100], strides = [1, 1]} : vector<4x122xbf16> to vector<4x100xbf16>
    %21 = vector.extract_strided_slice %18 {offsets = [0, 2], sizes = [4, 100], strides = [1, 1]} : vector<4x122xbf16> to vector<4x100xbf16>
    %22 = vector.extract_strided_slice %18 {offsets = [0, 10], sizes = [4, 100], strides = [1, 1]} : vector<4x122xbf16> to vector<4x100xbf16>
    %23 = vector.extract_strided_slice %18 {offsets = [0, 11], sizes = [4, 100], strides = [1, 1]} : vector<4x122xbf16> to vector<4x100xbf16>
    %24 = vector.extract_strided_slice %18 {offsets = [0, 12], sizes = [4, 100], strides = [1, 1]} : vector<4x122xbf16> to vector<4x100xbf16>
    %25 = vector.extract_strided_slice %18 {offsets = [0, 20], sizes = [4, 100], strides = [1, 1]} : vector<4x122xbf16> to vector<4x100xbf16>
    %26 = vector.extract_strided_slice %18 {offsets = [0, 21], sizes = [4, 100], strides = [1, 1]} : vector<4x122xbf16> to vector<4x100xbf16>
    %27 = vector.extract_strided_slice %18 {offsets = [0, 22], sizes = [4, 100], strides = [1, 1]} : vector<4x122xbf16> to vector<4x100xbf16>
    %28 = tpu.concatenate %19, %20, %21, %22, %23, %24, %25, %26, %27 in 0 : vector<4x100xbf16>, vector<4x100xbf16>, vector<4x100xbf16>, vector<4x100xbf16>, vector<4x100xbf16>, vector<4x100xbf16>, vector<4x100xbf16>, vector<4x100xbf16>, vector<4x100xbf16> -> vector<36x100xbf16>
    %c1 = arith.constant 1 : index
    %c0_11 = arith.constant 0 : index
    %c0_12 = arith.constant 0 : index
    %29 = vector.load %arg5[%c1, %c0_11, %c0_12] : memref<3x4x36xbf16, #tpu.memory_space<vmem>>, vector<1x4x36xbf16>
    %30 = vector.shape_cast %29 : vector<1x4x36xbf16> to vector<4x36xbf16>
    %cst_13 = arith.constant dense<0.000000e+00> : vector<4x100xf32>
    %31 = tpu.matmul %30, %28, %cst_13 {dimension_numbers = #tpu.dot_dimension_numbers<[1], [0], [0], [1], [0, 0, 1, 1], [], []>} : vector<4x36xbf16>, vector<36x100xbf16>, vector<4x100xf32> -> vector<4x100xf32>
    %32 = arith.addf %16, %31 : vector<4x100xf32>
    %c0_14 = arith.constant 0 : index
    %c0_15 = arith.constant 0 : index
    %c0_16 = arith.constant 0 : index
    %c0_17 = arith.constant 0 : index
    %33 = vector.load %arg4[%c0_14, %c0_15, %c0_16, %c0_17] : memref<1x1x4x122xbf16, #tpu.memory_space<vmem>>, vector<1x1x4x122xbf16>
    %34 = vector.shape_cast %33 : vector<1x1x4x122xbf16> to vector<4x122xbf16>
    %35 = vector.extract_strided_slice %34 {offsets = [0, 0], sizes = [4, 100], strides = [1, 1]} : vector<4x122xbf16> to vector<4x100xbf16>
    %36 = vector.extract_strided_slice %34 {offsets = [0, 1], sizes = [4, 100], strides = [1, 1]} : vector<4x122xbf16> to vector<4x100xbf16>
    %37 = vector.extract_strided_slice %34 {offsets = [0, 2], sizes = [4, 100], strides = [1, 1]} : vector<4x122xbf16> to vector<4x100xbf16>
    %38 = vector.extract_strided_slice %34 {offsets = [0, 10], sizes = [4, 100], strides = [1, 1]} : vector<4x122xbf16> to vector<4x100xbf16>
    %39 = vector.extract_strided_slice %34 {offsets = [0, 11], sizes = [4, 100], strides = [1, 1]} : vector<4x122xbf16> to vector<4x100xbf16>
    %40 = vector.extract_strided_slice %34 {offsets = [0, 12], sizes = [4, 100], strides = [1, 1]} : vector<4x122xbf16> to vector<4x100xbf16>
    %41 = vector.extract_strided_slice %34 {offsets = [0, 20], sizes = [4, 100], strides = [1, 1]} : vector<4x122xbf16> to vector<4x100xbf16>
    %42 = vector.extract_strided_slice %34 {offsets = [0, 21], sizes = [4, 100], strides = [1, 1]} : vector<4x122xbf16> to vector<4x100xbf16>
    %43 = vector.extract_strided_slice %34 {offsets = [0, 22], sizes = [4, 100], strides = [1, 1]} : vector<4x122xbf16> to vector<4x100xbf16>
    %44 = tpu.concatenate %35, %36, %37, %38, %39, %40, %41, %42, %43 in 0 : vector<4x100xbf16>, vector<4x100xbf16>, vector<4x100xbf16>, vector<4x100xbf16>, vector<4x100xbf16>, vector<4x100xbf16>, vector<4x100xbf16>, vector<4x100xbf16>, vector<4x100xbf16> -> vector<36x100xbf16>
    %c2 = arith.constant 2 : index
    %c0_18 = arith.constant 0 : index
    %c0_19 = arith.constant 0 : index
    %45 = vector.load %arg5[%c2, %c0_18, %c0_19] : memref<3x4x36xbf16, #tpu.memory_space<vmem>>, vector<1x4x36xbf16>
    %46 = vector.shape_cast %45 : vector<1x4x36xbf16> to vector<4x36xbf16>
    %cst_20 = arith.constant dense<0.000000e+00> : vector<4x100xf32>
    %47 = tpu.matmul %46, %44, %cst_20 {dimension_numbers = #tpu.dot_dimension_numbers<[1], [0], [0], [1], [0, 0, 1, 1], [], []>} : vector<4x36xbf16>, vector<36x100xbf16>, vector<4x100xf32> -> vector<4x100xf32>
    %48 = arith.addf %32, %47 : vector<4x100xf32>
    %c0_21 = arith.constant 0 : index
    %c0_22 = arith.constant 0 : index
    %49 = vector.load %arg6[%c0_21, %c0_22] : memref<1x100xf32, #tpu.memory_space<vmem>>, vector<1x100xf32>
    %50 = vector.broadcast %49 : vector<1x100xf32> to vector<4x100xf32>
    %51 = arith.mulf %48, %50 : vector<4x100xf32>
    %c0_23 = arith.constant 0 : index
    %c0_24 = arith.constant 0 : index
    %c0_25 = arith.constant 0 : index
    %c0_26 = arith.constant 0 : index
    %52 = vector.load %arg7[%c0_23, %c0_24, %c0_25, %c0_26] : memref<1x1x4x100xf32, #tpu.memory_space<vmem>>, vector<1x1x4x100xf32>
    %53 = vector.shape_cast %52 : vector<1x1x4x100xf32> to vector<4x100xf32>
    %54 = vector.shape_cast %51 : vector<4x100xf32> to vector<1x1x4x100xf32>
    tpu.vector_store %arg7[%c0_23, %c0_24, %c0_25, %c0_26], %54 {strides = array<i32>} : memref<1x1x4x100xf32, #tpu.memory_space<vmem>>, vector<1x1x4x100xf32>,
    %cst_27 = arith.constant dense<0.000000e+00> : vector<4xf32>
    %55 = vector.multi_reduction <add>, %51, %cst_27 [1] : vector<4x100xf32> to vector<4xf32>
    %56 = vector.shape_cast %55 : vector<4xf32> to vector<4x1xf32>
    %c0_28 = arith.constant 0 : index
    %c0_29 = arith.constant 0 : index
    %c0_30 = arith.constant 0 : index
    %c0_31 = arith.constant 0 : index
    %57 = vector.load %arg8[%c0_28, %c0_29, %c0_30, %c0_31] : memref<1x1x4x1xf32, #tpu.memory_space<vmem>>, vector<1x1x4x1xf32>
    %58 = vector.shape_cast %57 : vector<1x1x4x1xf32> to vector<4x1xf32>
    %59 = vector.shape_cast %56 : vector<4x1xf32> to vector<1x1x4x1xf32>
    tpu.vector_store %arg8[%c0_28, %c0_29, %c0_30, %c0_31], %59 {strides = array<i32>} : memref<1x1x4x1xf32, #tpu.memory_space<vmem>>, vector<1x1x4x1xf32>,
    %60 = arith.mulf %51, %51 : vector<4x100xf32>
    %cst_32 = arith.constant dense<0.000000e+00> : vector<4xf32>
    %61 = vector.multi_reduction <add>, %60, %cst_32 [1] : vector<4x100xf32> to vector<4xf32>
    %62 = vector.shape_cast %61 : vector<4xf32> to vector<4x1xf32>
    %c0_33 = arith.constant 0 : index
    %c0_34 = arith.constant 0 : index
    %c0_35 = arith.constant 0 : index
    %c0_36 = arith.constant 0 : index
    %63 = vector.load %arg9[%c0_33, %c0_34, %c0_35, %c0_36] : memref<1x1x4x1xf32, #tpu.memory_space<vmem>>, vector<1x1x4x1xf32>
    %64 = vector.shape_cast %63 : vector<1x1x4x1xf32> to vector<4x1xf32>
    %65 = vector.shape_cast %62 : vector<4x1xf32> to vector<1x1x4x1xf32>
    tpu.vector_store %arg9[%c0_33, %c0_34, %c0_35, %c0_36], %65 {strides = array<i32>} : memref<1x1x4x1xf32, #tpu.memory_space<vmem>>, vector<1x1x4x1xf32>,
    return
  }
  func.func @transform_0(%arg0: i32, %arg1: i32) -> (i32, i32, i32, i32) {
    %c0_i32 = arith.constant 0 : i32
    %0 = arith.addi %arg1, %c0_i32 : i32
    %c0_i32_0 = arith.constant 0 : i32
    %c0_i32_1 = arith.constant 0 : i32
    %c0_i32_2 = arith.constant 0 : i32
    return %arg0, %0, %c0_i32_0, %c0_i32_1 : i32, i32, i32, i32
  }
  func.func @transform_1(%arg0: i32, %arg1: i32) -> (i32, i32, i32, i32) {
    %c1_i32 = arith.constant 1 : i32
    %0 = arith.addi %arg1, %c1_i32 : i32
    %c0_i32 = arith.constant 0 : i32
    %c0_i32_0 = arith.constant 0 : i32
    %c0_i32_1 = arith.constant 0 : i32
    return %arg0, %0, %c0_i32, %c0_i32_0 : i32, i32, i32, i32
  }
  func.func @transform_2(%arg0: i32, %arg1: i32) -> (i32, i32, i32, i32) {
    %c2_i32 = arith.constant 2 : i32
    %0 = arith.addi %arg1, %c2_i32 : i32
    %c0_i32 = arith.constant 0 : i32
    %c0_i32_0 = arith.constant 0 : i32
    %c0_i32_1 = arith.constant 0 : i32
    return %arg0, %0, %c0_i32, %c0_i32_0 : i32, i32, i32, i32
  }
  func.func @transform_3(%arg0: i32, %arg1: i32) -> (i32, i32, i32) {
    %c0_i32 = arith.constant 0 : i32
    %c0_i32_0 = arith.constant 0 : i32
    %c0_i32_1 = arith.constant 0 : i32
    %c0_i32_2 = arith.constant 0 : i32
    return %c0_i32, %c0_i32_0, %c0_i32_1 : i32, i32, i32
  }
  func.func @transform_4(%arg0: i32, %arg1: i32) -> (i32, i32) {
    %c0_i32 = arith.constant 0 : i32
    %c0_i32_0 = arith.constant 0 : i32
    %c0_i32_1 = arith.constant 0 : i32
    return %c0_i32, %c0_i32_0 : i32, i32
  }
  func.func @transform_5(%arg0: i32, %arg1: i32) -> (i32, i32, i32, i32) {
    %c0_i32 = arith.constant 0 : i32
    %c0_i32_0 = arith.constant 0 : i32
    %c0_i32_1 = arith.constant 0 : i32
    return %arg0, %arg1, %c0_i32, %c0_i32_0 : i32, i32, i32, i32
  }
  func.func @transform_6(%arg0: i32, %arg1: i32) -> (i32, i32, i32, i32) {
    %c0_i32 = arith.constant 0 : i32
    %c0_i32_0 = arith.constant 0 : i32
    %c0_i32_1 = arith.constant 0 : i32
    return %arg0, %arg1, %c0_i32, %c0_i32_0 : i32, i32, i32, i32
  }
  func.func @transform_7(%arg0: i32, %arg1: i32) -> (i32, i32, i32, i32) {
    %c0_i32 = arith.constant 0 : i32
    %c0_i32_0 = arith.constant 0 : i32
    %c0_i32_1 = arith.constant 0 : i32
    return %arg0, %arg1, %c0_i32, %c0_i32_0 : i32, i32, i32, i32
  }
}

module attributes {stable_mosaic.version = 11 : i64} {
  func.func @_norm_act_kernel(%arg0: i32, %arg1: i32, %arg2: memref<1x1x4x100xf32, #tpu.memory_space<vmem>>, %arg3: memref<1x4x1xf32, #tpu.memory_space<vmem>>, %arg4: memref<1x4x1xf32, #tpu.memory_space<vmem>>, %arg5: memref<1x100xf32, #tpu.memory_space<vmem>>, %arg6: memref<1x1x4x100xbf16, #tpu.memory_space<vmem>>) attributes {dimension_semantics = [#tpu.dimension_semantics<parallel>, #tpu.dimension_semantics<parallel>], iteration_bounds = array<i64: 2, 8>, scalar_prefetch = 0 : i64, scratch_operands = 0 : i64, tpu.core_type = #tpu.core_type<tc>, window_params = [{transform_indices = @transform_0, window_bounds = array<i64: 1, 1, 4, 100>}, {transform_indices = @transform_1, window_bounds = array<i64: 1, 4, 1>}, {transform_indices = @transform_2, window_bounds = array<i64: 1, 4, 1>}, {pipeline_mode = #tpu.pipeline_mode<synchronous>, transform_indices = @transform_3, window_bounds = array<i64: 1, 100>}, {transform_indices = @transform_4, window_bounds = array<i64: 1, 1, 4, 100>}]} {
    %c0 = arith.constant 0 : index
    %c0_0 = arith.constant 0 : index
    %c0_1 = arith.constant 0 : index
    %c0_2 = arith.constant 0 : index
    %0 = vector.load %arg2[%c0, %c0_0, %c0_1, %c0_2] : memref<1x1x4x100xf32, #tpu.memory_space<vmem>>, vector<1x1x4x100xf32>
    %1 = vector.shape_cast %0 : vector<1x1x4x100xf32> to vector<4x100xf32>
    %c0_3 = arith.constant 0 : index
    %c0_4 = arith.constant 0 : index
    %c0_5 = arith.constant 0 : index
    %2 = vector.load %arg3[%c0_3, %c0_4, %c0_5] : memref<1x4x1xf32, #tpu.memory_space<vmem>>, vector<1x4x1xf32>
    %3 = vector.shape_cast %2 : vector<1x4x1xf32> to vector<4x1xf32>
    %4 = vector.broadcast %3 : vector<4x1xf32> to vector<4x100xf32>
    %5 = arith.mulf %1, %4 : vector<4x100xf32>
    %c0_6 = arith.constant 0 : index
    %c0_7 = arith.constant 0 : index
    %c0_8 = arith.constant 0 : index
    %6 = vector.load %arg4[%c0_6, %c0_7, %c0_8] : memref<1x4x1xf32, #tpu.memory_space<vmem>>, vector<1x4x1xf32>
    %7 = vector.shape_cast %6 : vector<1x4x1xf32> to vector<4x1xf32>
    %8 = vector.broadcast %7 : vector<4x1xf32> to vector<4x100xf32>
    %9 = arith.addf %5, %8 : vector<4x100xf32>
    %cst = arith.constant 0.000000e+00 : f32
    %10 = vector.broadcast %cst : f32 to vector<4x100xf32>
    %11 = arith.maximumf %9, %10 : vector<4x100xf32>
    %c0_9 = arith.constant 0 : index
    %c0_10 = arith.constant 0 : index
    %12 = vector.load %arg5[%c0_9, %c0_10] : memref<1x100xf32, #tpu.memory_space<vmem>>, vector<1x100xf32>
    %13 = vector.broadcast %12 : vector<1x100xf32> to vector<4x100xf32>
    %14 = arith.mulf %11, %13 : vector<4x100xf32>
    %15 = arith.truncf %14 : vector<4x100xf32> to vector<4x100xbf16>
    %c0_11 = arith.constant 0 : index
    %c0_12 = arith.constant 0 : index
    %c0_13 = arith.constant 0 : index
    %c0_14 = arith.constant 0 : index
    %16 = vector.load %arg6[%c0_11, %c0_12, %c0_13, %c0_14] : memref<1x1x4x100xbf16, #tpu.memory_space<vmem>>, vector<1x1x4x100xbf16>
    %17 = vector.shape_cast %16 : vector<1x1x4x100xbf16> to vector<4x100xbf16>
    %18 = vector.shape_cast %15 : vector<4x100xbf16> to vector<1x1x4x100xbf16>
    tpu.vector_store %arg6[%c0_11, %c0_12, %c0_13, %c0_14], %18 {strides = array<i32>} : memref<1x1x4x100xbf16, #tpu.memory_space<vmem>>, vector<1x1x4x100xbf16>,
    return
  }
  func.func @transform_0(%arg0: i32, %arg1: i32) -> (i32, i32, i32, i32) {
    %c0_i32 = arith.constant 0 : i32
    %c0_i32_0 = arith.constant 0 : i32
    %c0_i32_1 = arith.constant 0 : i32
    return %arg0, %arg1, %c0_i32, %c0_i32_0 : i32, i32, i32, i32
  }
  func.func @transform_1(%arg0: i32, %arg1: i32) -> (i32, i32, i32) {
    %c0_i32 = arith.constant 0 : i32
    %c0_i32_0 = arith.constant 0 : i32
    %c0_i32_1 = arith.constant 0 : i32
    return %arg0, %c0_i32, %c0_i32_0 : i32, i32, i32
  }
  func.func @transform_2(%arg0: i32, %arg1: i32) -> (i32, i32, i32) {
    %c0_i32 = arith.constant 0 : i32
    %c0_i32_0 = arith.constant 0 : i32
    %c0_i32_1 = arith.constant 0 : i32
    return %arg0, %c0_i32, %c0_i32_0 : i32, i32, i32
  }
  func.func @transform_3(%arg0: i32, %arg1: i32) -> (i32, i32) {
    %c0_i32 = arith.constant 0 : i32
    %c0_i32_0 = arith.constant 0 : i32
    %c0_i32_1 = arith.constant 0 : i32
    return %c0_i32, %c0_i32_0 : i32, i32
  }
  func.func @transform_4(%arg0: i32, %arg1: i32) -> (i32, i32, i32, i32) {
    %c0_i32 = arith.constant 0 : i32
    %c0_i32_0 = arith.constant 0 : i32
    %c0_i32_1 = arith.constant 0 : i32
    return %arg0, %arg1, %c0_i32, %c0_i32_0 : i32, i32, i32, i32
  }
}

module attributes {stable_mosaic.version = 11 : i64} {
  func.func @_norm_act_kernel(%arg0: i32, %arg1: i32, %arg2: memref<1x1x4x100xf32, #tpu.memory_space<vmem>>, %arg3: memref<1x4x1xf32, #tpu.memory_space<vmem>>, %arg4: memref<1x4x1xf32, #tpu.memory_space<vmem>>, %arg5: memref<1x100xf32, #tpu.memory_space<vmem>>, %arg6: memref<1x1x4x100xbf16, #tpu.memory_space<vmem>>) attributes {dimension_semantics = [#tpu.dimension_semantics<parallel>, #tpu.dimension_semantics<parallel>], iteration_bounds = array<i64: 2, 8>, scalar_prefetch = 0 : i64, scratch_operands = 0 : i64, tpu.core_type = #tpu.core_type<tc>, window_params = [{transform_indices = @transform_0, window_bounds = array<i64: 1, 1, 4, 100>}, {transform_indices = @transform_1, window_bounds = array<i64: 1, 4, 1>}, {transform_indices = @transform_2, window_bounds = array<i64: 1, 4, 1>}, {pipeline_mode = #tpu.pipeline_mode<synchronous>, transform_indices = @transform_3, window_bounds = array<i64: 1, 100>}, {transform_indices = @transform_4, window_bounds = array<i64: 1, 1, 4, 100>}]} {
    %c0 = arith.constant 0 : index
    %c0_0 = arith.constant 0 : index
    %c0_1 = arith.constant 0 : index
    %c0_2 = arith.constant 0 : index
    %0 = vector.load %arg2[%c0, %c0_0, %c0_1, %c0_2] : memref<1x1x4x100xf32, #tpu.memory_space<vmem>>, vector<1x1x4x100xf32>
    %1 = vector.shape_cast %0 : vector<1x1x4x100xf32> to vector<4x100xf32>
    %c0_3 = arith.constant 0 : index
    %c0_4 = arith.constant 0 : index
    %c0_5 = arith.constant 0 : index
    %2 = vector.load %arg3[%c0_3, %c0_4, %c0_5] : memref<1x4x1xf32, #tpu.memory_space<vmem>>, vector<1x4x1xf32>
    %3 = vector.shape_cast %2 : vector<1x4x1xf32> to vector<4x1xf32>
    %4 = vector.broadcast %3 : vector<4x1xf32> to vector<4x100xf32>
    %5 = arith.mulf %1, %4 : vector<4x100xf32>
    %c0_6 = arith.constant 0 : index
    %c0_7 = arith.constant 0 : index
    %c0_8 = arith.constant 0 : index
    %6 = vector.load %arg4[%c0_6, %c0_7, %c0_8] : memref<1x4x1xf32, #tpu.memory_space<vmem>>, vector<1x4x1xf32>
    %7 = vector.shape_cast %6 : vector<1x4x1xf32> to vector<4x1xf32>
    %8 = vector.broadcast %7 : vector<4x1xf32> to vector<4x100xf32>
    %9 = arith.addf %5, %8 : vector<4x100xf32>
    %cst = arith.constant 0.000000e+00 : f32
    %10 = vector.broadcast %cst : f32 to vector<4x100xf32>
    %11 = arith.cmpf oge, %9, %10 : vector<4x100xf32>
    %cst_9 = arith.constant 0.00999999977 : f32
    %12 = vector.broadcast %cst_9 : f32 to vector<4x100xf32>
    %13 = arith.mulf %12, %9 : vector<4x100xf32>
    %14 = arith.select %11, %9, %13 : vector<4x100xi1>, vector<4x100xf32>
    %c0_10 = arith.constant 0 : index
    %c0_11 = arith.constant 0 : index
    %15 = vector.load %arg5[%c0_10, %c0_11] : memref<1x100xf32, #tpu.memory_space<vmem>>, vector<1x100xf32>
    %16 = vector.broadcast %15 : vector<1x100xf32> to vector<4x100xf32>
    %17 = arith.mulf %14, %16 : vector<4x100xf32>
    %18 = arith.truncf %17 : vector<4x100xf32> to vector<4x100xbf16>
    %c0_12 = arith.constant 0 : index
    %c0_13 = arith.constant 0 : index
    %c0_14 = arith.constant 0 : index
    %c0_15 = arith.constant 0 : index
    %19 = vector.load %arg6[%c0_12, %c0_13, %c0_14, %c0_15] : memref<1x1x4x100xbf16, #tpu.memory_space<vmem>>, vector<1x1x4x100xbf16>
    %20 = vector.shape_cast %19 : vector<1x1x4x100xbf16> to vector<4x100xbf16>
    %21 = vector.shape_cast %18 : vector<4x100xbf16> to vector<1x1x4x100xbf16>
    tpu.vector_store %arg6[%c0_12, %c0_13, %c0_14, %c0_15], %21 {strides = array<i32>} : memref<1x1x4x100xbf16, #tpu.memory_space<vmem>>, vector<1x1x4x100xbf16>,
    return
  }
  func.func @transform_0(%arg0: i32, %arg1: i32) -> (i32, i32, i32, i32) {
    %c0_i32 = arith.constant 0 : i32
    %c0_i32_0 = arith.constant 0 : i32
    %c0_i32_1 = arith.constant 0 : i32
    return %arg0, %arg1, %c0_i32, %c0_i32_0 : i32, i32, i32, i32
  }
  func.func @transform_1(%arg0: i32, %arg1: i32) -> (i32, i32, i32) {
    %c0_i32 = arith.constant 0 : i32
    %c0_i32_0 = arith.constant 0 : i32
    %c0_i32_1 = arith.constant 0 : i32
    return %arg0, %c0_i32, %c0_i32_0 : i32, i32, i32
  }
  func.func @transform_2(%arg0: i32, %arg1: i32) -> (i32, i32, i32) {
    %c0_i32 = arith.constant 0 : i32
    %c0_i32_0 = arith.constant 0 : i32
    %c0_i32_1 = arith.constant 0 : i32
    return %arg0, %c0_i32, %c0_i32_0 : i32, i32, i32
  }
  func.func @transform_3(%arg0: i32, %arg1: i32) -> (i32, i32) {
    %c0_i32 = arith.constant 0 : i32
    %c0_i32_0 = arith.constant 0 : i32
    %c0_i32_1 = arith.constant 0 : i32
    return %c0_i32, %c0_i32_0 : i32, i32
  }
  func.func @transform_4(%arg0: i32, %arg1: i32) -> (i32, i32, i32, i32) {
    %c0_i32 = arith.constant 0 : i32
    %c0_i32_0 = arith.constant 0 : i32
    %c0_i32_1 = arith.constant 0 : i32
    return %arg0, %arg1, %c0_i32, %c0_i32_0 : i32, i32, i32, i32
  }
}

module attributes {stable_mosaic.version = 11 : i64} {
  func.func @_norm_res_act_kernel(%arg0: i32, %arg1: i32, %arg2: memref<1x1x4x100xf32, #tpu.memory_space<vmem>>, %arg3: memref<1x4x1xf32, #tpu.memory_space<vmem>>, %arg4: memref<1x4x1xf32, #tpu.memory_space<vmem>>, %arg5: memref<1x1x4x100xbf16, #tpu.memory_space<vmem>>, %arg6: memref<1x100xf32, #tpu.memory_space<vmem>>, %arg7: memref<1x1x4x100xf32, #tpu.memory_space<vmem>>) attributes {dimension_semantics = [#tpu.dimension_semantics<parallel>, #tpu.dimension_semantics<parallel>], iteration_bounds = array<i64: 2, 8>, scalar_prefetch = 0 : i64, scratch_operands = 0 : i64, tpu.core_type = #tpu.core_type<tc>, window_params = [{transform_indices = @transform_0, window_bounds = array<i64: 1, 1, 4, 100>}, {transform_indices = @transform_1, window_bounds = array<i64: 1, 4, 1>}, {transform_indices = @transform_2, window_bounds = array<i64: 1, 4, 1>}, {transform_indices = @transform_3, window_bounds = array<i64: 1, 1, 4, 100>}, {pipeline_mode = #tpu.pipeline_mode<synchronous>, transform_indices = @transform_4, window_bounds = array<i64: 1, 100>}, {transform_indices = @transform_5, window_bounds = array<i64: 1, 1, 4, 100>}]} {
    %c0 = arith.constant 0 : index
    %c0_0 = arith.constant 0 : index
    %c0_1 = arith.constant 0 : index
    %c0_2 = arith.constant 0 : index
    %0 = vector.load %arg2[%c0, %c0_0, %c0_1, %c0_2] : memref<1x1x4x100xf32, #tpu.memory_space<vmem>>, vector<1x1x4x100xf32>
    %1 = vector.shape_cast %0 : vector<1x1x4x100xf32> to vector<4x100xf32>
    %c0_3 = arith.constant 0 : index
    %c0_4 = arith.constant 0 : index
    %c0_5 = arith.constant 0 : index
    %2 = vector.load %arg3[%c0_3, %c0_4, %c0_5] : memref<1x4x1xf32, #tpu.memory_space<vmem>>, vector<1x4x1xf32>
    %3 = vector.shape_cast %2 : vector<1x4x1xf32> to vector<4x1xf32>
    %4 = vector.broadcast %3 : vector<4x1xf32> to vector<4x100xf32>
    %5 = arith.mulf %1, %4 : vector<4x100xf32>
    %c0_6 = arith.constant 0 : index
    %c0_7 = arith.constant 0 : index
    %c0_8 = arith.constant 0 : index
    %6 = vector.load %arg4[%c0_6, %c0_7, %c0_8] : memref<1x4x1xf32, #tpu.memory_space<vmem>>, vector<1x4x1xf32>
    %7 = vector.shape_cast %6 : vector<1x4x1xf32> to vector<4x1xf32>
    %8 = vector.broadcast %7 : vector<4x1xf32> to vector<4x100xf32>
    %9 = arith.addf %5, %8 : vector<4x100xf32>
    %c0_9 = arith.constant 0 : index
    %c0_10 = arith.constant 0 : index
    %c0_11 = arith.constant 0 : index
    %c0_12 = arith.constant 0 : index
    %10 = vector.load %arg5[%c0_9, %c0_10, %c0_11, %c0_12] : memref<1x1x4x100xbf16, #tpu.memory_space<vmem>>, vector<1x1x4x100xbf16>
    %11 = vector.shape_cast %10 : vector<1x1x4x100xbf16> to vector<4x100xbf16>
    %12 = arith.extf %11 : vector<4x100xbf16> to vector<4x100xf32>
    %13 = arith.addf %9, %12 : vector<4x100xf32>
    %cst = arith.constant 0.000000e+00 : f32
    %14 = vector.broadcast %cst : f32 to vector<4x100xf32>
    %15 = arith.cmpf oge, %13, %14 : vector<4x100xf32>
    %cst_13 = arith.constant 0.00999999977 : f32
    %16 = vector.broadcast %cst_13 : f32 to vector<4x100xf32>
    %17 = arith.mulf %16, %13 : vector<4x100xf32>
    %18 = arith.select %15, %13, %17 : vector<4x100xi1>, vector<4x100xf32>
    %c0_14 = arith.constant 0 : index
    %c0_15 = arith.constant 0 : index
    %19 = vector.load %arg6[%c0_14, %c0_15] : memref<1x100xf32, #tpu.memory_space<vmem>>, vector<1x100xf32>
    %20 = vector.broadcast %19 : vector<1x100xf32> to vector<4x100xf32>
    %21 = arith.mulf %18, %20 : vector<4x100xf32>
    %c0_16 = arith.constant 0 : index
    %c0_17 = arith.constant 0 : index
    %c0_18 = arith.constant 0 : index
    %c0_19 = arith.constant 0 : index
    %22 = vector.load %arg7[%c0_16, %c0_17, %c0_18, %c0_19] : memref<1x1x4x100xf32, #tpu.memory_space<vmem>>, vector<1x1x4x100xf32>
    %23 = vector.shape_cast %22 : vector<1x1x4x100xf32> to vector<4x100xf32>
    %24 = vector.shape_cast %21 : vector<4x100xf32> to vector<1x1x4x100xf32>
    tpu.vector_store %arg7[%c0_16, %c0_17, %c0_18, %c0_19], %24 {strides = array<i32>} : memref<1x1x4x100xf32, #tpu.memory_space<vmem>>, vector<1x1x4x100xf32>,
    return
  }
  func.func @transform_0(%arg0: i32, %arg1: i32) -> (i32, i32, i32, i32) {
    %c0_i32 = arith.constant 0 : i32
    %c0_i32_0 = arith.constant 0 : i32
    %c0_i32_1 = arith.constant 0 : i32
    return %arg0, %arg1, %c0_i32, %c0_i32_0 : i32, i32, i32, i32
  }
  func.func @transform_1(%arg0: i32, %arg1: i32) -> (i32, i32, i32) {
    %c0_i32 = arith.constant 0 : i32
    %c0_i32_0 = arith.constant 0 : i32
    %c0_i32_1 = arith.constant 0 : i32
    return %arg0, %c0_i32, %c0_i32_0 : i32, i32, i32
  }
  func.func @transform_2(%arg0: i32, %arg1: i32) -> (i32, i32, i32) {
    %c0_i32 = arith.constant 0 : i32
    %c0_i32_0 = arith.constant 0 : i32
    %c0_i32_1 = arith.constant 0 : i32
    return %arg0, %c0_i32, %c0_i32_0 : i32, i32, i32
  }
  func.func @transform_3(%arg0: i32, %arg1: i32) -> (i32, i32, i32, i32) {
    %c0_i32 = arith.constant 0 : i32
    %c0_i32_0 = arith.constant 0 : i32
    %c0_i32_1 = arith.constant 0 : i32
    return %arg0, %arg1, %c0_i32, %c0_i32_0 : i32, i32, i32, i32
  }
  func.func @transform_4(%arg0: i32, %arg1: i32) -> (i32, i32) {
    %c0_i32 = arith.constant 0 : i32
    %c0_i32_0 = arith.constant 0 : i32
    %c0_i32_1 = arith.constant 0 : i32
    return %c0_i32, %c0_i32_0 : i32, i32
  }
  func.func @transform_5(%arg0: i32, %arg1: i32) -> (i32, i32, i32, i32) {
    %c0_i32 = arith.constant 0 : i32
    %c0_i32_0 = arith.constant 0 : i32
    %c0_i32_1 = arith.constant 0 : i32
    return %arg0, %arg1, %c0_i32, %c0_i32_0 : i32, i32, i32, i32
  }
}

</mosaic_0001>

<bundles_post_ra>
// kernel: tile.8
= control target key start
LH: loop header
LB: loop body
LE: loop exit
PB: predicated region body
PF: predicated region fallthrough
CT: control target
= control target key end

     0   :  { %s22_s0 = inlined_call_operand.vmem [shape: f32[4], index: 0, kind: input, shape index: {}]   ;;  %s23_s1 = inlined_call_operand.vmem [shape: f32[8,4], index: 1, kind: output, shape index: {}]  }
   0x1   :  { %v4_v0 = vld [vmem:[%s22_s0] ss:$0 sm:$0xff] }
   0x2   :  { %5 = vst [vmem:[%s23_s1] sm:$0xff] %v4_v0 }

// kernel: tile.0
= control target key start
LH: loop header
LB: loop body
LE: loop exit
PB: predicated region body
PF: predicated region fallthrough
CT: control target
= control target key end

     0   :  { %vm3_vm0 = vcmask 7168   ;;  %s30_s8 = smov 125   ;;  %s31_s11 = smov 126   ;;  %s57_s0 = inlined_call_operand.vmem [shape: f32[8,4], index: 0, kind: input, shape index: {}]   ;;  %s58_s1 = inlined_call_operand.vmem [shape: f32[32,1], index: 1, kind: output, shape index: {}]  }
   0x1   :  { %v5_v0 = vld [vmem:[%s57_s0] sm:$0xff]   ;;  %s29_s0 = smov 127  }
   0x2   :  { %6 = vrot.lane.b32.xlu0 %v5_v0, %s29_s0  ;;  %18 = vrot.lane.b32.xlu1 %v5_v0, %s30_s8  ;;  %4 = vst.msk [vmem:[%s58_s1] ss:$4 sm:$0xff] %vm3_vm0, %v5_v0  }
   0x6   :  { %12 = vrot.lane.b32.xlu0 %v5_v0, %s31_s11 }
  0x74   :  { %v7_v1 = vpop.permute.xlu0 %6   ;;  %v19_v2 = vpop.permute.xlu1 %18  }
  0x75   :  { %23 = vst.msk [vmem:[%s58_s1 + $0x1] ss:$4 sm:$0xff] %vm3_vm0, %v7_v1   ;;  %25 = vst.msk [vmem:[%s58_s1 + $0x3] ss:$4 sm:$0xff] %vm3_vm0, %v19_v2  }
  0x78   :  { %v13_v3 = vpop.permute.xlu0 %12  }
  0x79   :  { %24 = vst.msk [vmem:[%s58_s1 + $0x2] ss:$4 sm:$0xff] %vm3_vm0, %v13_v3  }

// kernel: stage_decoder_forward.7
= control target key start
LH: loop header
LB: loop body
LE: loop exit
PB: predicated region body
PF: predicated region fallthrough
CT: control target
= control target key end

     0   :  { %s507_s12 = smov 0   ;;  %s509_s13 = smov 0   ;;  %s564_s0 = inlined_call_operand.vmem [shape: bf16[2,8,64], index: 0, kind: input, shape index: {}]   ;;  %s565_s1 = inlined_call_operand.vmem [shape: bf16[32,8], index: 1, kind: input, shape index: {}]   ;;  %s566_s2 = inlined_call_operand.vmem [shape: f32[32,1], index: 2, kind: input, shape index: {}]   ;;  %s567_s3 = inlined_call_operand.vmem [shape: bf16[2,32,64], index: 3, kind: output, shape index: {}]  }
   0x1   :  { %s511_s14 = smov 0  }
   0x2 LB: > { %s25_s15 = sadd.s32 1, %s480_s13  ;;  %p404_p0 = scmp.ge.s32.totalorder %s484_s14, 1  ;;  %s484_s14 = sphi %s511_s14, %s13_s14   ;;  %s480_s13 = sphi %s509_s13, %s569_s13   ;;  %s476_s12 = sphi %s507_s12, %s568_s12  }
   0x3   : > { %p27_p1 = scmp.ge.s32.totalorder %s25_s15, 2  ;;  %p155_p2 = scmp.lt.s32.totalorder %s484_s14, 3 }
   0x5   : > { %s571_s15 = smov (%p27_p1, %s25_s15), 0  ;;  %p156_p3 = pnand %p404_p0, %p155_p2 }
   0x6   : > { %p184_p4 = scmp.lt.s32.totalorder (!%p156_p3), %s476_s12, 1  ;;  %v460_v0 = vld [vmem:[%s565_s1] sm:$0xff] (!%p156_p3)   ;;  %vm239_vm0 = vcmask (!%p156_p3), 64512   ;;  %v207_v1 = vld [vmem:[%s566_s2 + $0x10] sm:$0xff] (!%p156_p3)  ;;  %v486_v3 = vmov (!%p156_p3), 0   ;;  %vm246_vm1 = vcmask (!%p156_p3), 1043456  }
   0x7   : > { %159 = sbr.rel (%p156_p3) target bundleno = 242 (0xf2), region = 32  ;;  %v205_v2 = vld [vmem:[%s566_s2] sm:$0xff] (!%p156_p3)  ;;  %428 = vmatprep.mubr.msk.bf16.mxu0 (!%p156_p3), %vm239_vm0, %v460_v0  ;;  %459 = vset.pattern.permute.xlu1 (!%p156_p3), %v486_v3  ;;  %v208_v4 = vld [vmem:[%s566_s2 + $0x18] sm:$0xff] (!%p156_p3)  ;;  %v206_v6 = vld [vmem:[%s566_s2 + $0x8] sm:$0xff] (!%p156_p3)  ;;  %vm315_vm2 = vcmask (!%p156_p3), 519168  }
   0x8   : > { %458 = vset.pattern.permute.xlu0 (!%p156_p3), %v486_v3  ;;  %221 = vperm.xlu1 (!%p156_p3), %459, %v207_v1   ;;  %v461_v8 = vld [vmem:[%s565_s1 + $0x8] sm:$0xff] (!%p156_p3)  }
   0x9   : > { %211 = vperm.xlu0 (!%p156_p3), %458, %v205_v2  }
   0xc   : > { %226 = vperm.xlu1 (!%p156_p3), %459, %v208_v4  }
   0xd   : > { %216 = vperm.xlu0 (!%p156_p3), %458, %v206_v6  }
   0xe   : > { %s573_s12 = smov (!%p184_p4, %s476_s12), 1 }
   0xf   : > { %s405_s22 = sshll.u32 %s573_s12, 2  ;;  %s418_s5 = sshll.u32 %s573_s12, 4 }
  0x10   : > { %s190_s25 = scalar_lea.vmem %s564_s0, %s405_s22  ;;  %s198_s8 = scalar_lea.vmem %s567_s3, %s418_s5 }
  0x11   : > { %v204_v5 = vld [vmem:[%s190_s25] sm:$0xf] }
  0x12   : > { %432 = vmatprep.subr.msk.bf16.mxu0 %vm246_vm1, %v204_v5  ;;  %v248_v7 = vsel %vm246_vm1, %v204_v5, 0 }
  0x13   : > { %427 = vmatpush3.bf16.msra.mxu0 %v248_v7 }
  0x16   : > { %429 = vmatmul.mubr.msk.bf16.vlgmr.msra.gmra.mrb[0].mxu0 %vm239_vm0, %v461_v8 }
  0x87   : > { %v222_v9 = vpop.permute.xlu1 %221 }
  0x88   : > { %v212_v10 = vpop.permute.xlu0 %211 }
  0x8b   : > { %v227_v14 = vpop.permute.xlu1 %226 }
  0x8c   : > { %v217_v17 = vpop.permute.xlu0 %216 }
  0xe9   : > { %v430_v11 = vpop.f32.mrb[0].mxu0 }
  0xea   : > { %v293_v12 = vadd.f32 %v430_v11, %v222_v9  ;;  %v284_v13 = vpop.f32.mrb[1].mxu0 }
  0xeb   : > { %v285_v15 = vadd.f32 %v284_v13, %v212_v10  ;;  %v431_v16 = vpop.f32.mrb[2].mxu0 }
  0xec   : > { %v421_v18 = vpack.c.bf16 %v293_v12, %v293_v12  ;;  %v296_v19 = vadd.f32 %v431_v16, %v227_v14  ;;  %v287_v20 = vpop.f32.mrb[3].mxu0 }
  0xed   : > { %v419_v21 = vpack.c.bf16 %v285_v15, %v285_v15  ;;  %v288_v22 = vadd.f32 %v287_v20, %v217_v17 }
  0xee   : > { %318 = vst.msk [vmem:[%s198_s8 + $0x8] sm:$0xf] %vm315_vm2, %v421_v18  ;;  %v422_v23 = vpack.c.bf16 %v296_v19, %v296_v19 }
  0xef   : > { %316 = vst.msk [vmem:[%s198_s8] sm:$0xf] %vm315_vm2, %v419_v21  ;;  %v420_v24 = vpack.c.bf16 %v288_v22, %v288_v22 }
  0xf0   : > { %319 = vst.msk [vmem:[%s198_s8 + $0xc] sm:$0xf] %vm315_vm2, %v422_v23 }
  0xf1   : > { %317 = vst.msk [vmem:[%s198_s8 + $0x4] sm:$0xf] %vm315_vm2, %v420_v24 }
  0xf2 PF: > { %s13_s14 = sadd.s32 1, %s484_s14   ;;  %s568_s12 = smov %s480_s13 }
  0xf3   : > { %p10_p5 = scmp.ge.s32.totalorder %s13_s14, 4   ;;  %s569_s13 = smov %s571_s15 }
  0xf5   :  { %12 = sbr.rel (!%p10_p5) target bundleno = 2 (0x2), region = 62 }

// kernel: stage_decoder_forward.8
= control target key start
LH: loop header
LB: loop body
LE: loop exit
PB: predicated region body
PF: predicated region fallthrough
CT: control target
= control target key end

     0   :  { %s1878_s21 = smov 0   ;;  %s1880_s22 = smov 0   ;;  %s2167_s0 = inlined_call_operand.vmem [shape: bf16[2,10,4,122], index: 0, kind: input, shape index: {}, may-alias: {0,1,2}]   ;;  %s2168_s1 = inlined_call_operand.vmem [shape: bf16[2,10,4,122], index: 1, kind: input, shape index: {}, may-alias: {0,1,2}]   ;;  %s2169_s2 = inlined_call_operand.vmem [shape: bf16[2,10,4,122], index: 2, kind: input, shape index: {}, may-alias: {0,1,2}]   ;;  %s2170_s3 = inlined_call_operand.vmem [shape: bf16[2,10,4,122], index: 3, kind: input, shape index: {}, may-alias: {3,4,5}]   ;;  %s2171_s4 = inlined_call_operand.vmem [shape: bf16[2,10,4,122], index: 4, kind: input, shape index: {}, may-alias: {3,4,5}]   ;;  %s2172_s5 = inlined_call_operand.vmem [shape: bf16[2,10,4,122], index: 5, kind: input, shape index: {}, may-alias: {3,4,5}]   ;;  %s2173_s6 = inlined_call_operand.vmem [shape: bf16[3,4,36], index: 6, kind: input, shape index: {}]   ;;  %s2174_s7 = inlined_call_operand.vmem [shape: bf16[3,4,36], index: 7, kind: input, shape index: {}]   ;;  %s2175_s8 = inlined_call_operand.vmem [shape: f32[4,1], index: 8, kind: input, shape index: {}]   ;;  %s2176_s9 = inlined_call_operand.vmem [shape: f32[1,100], index: 9, kind: input, shape index: {}]   ;;  %s2177_s10 = inlined_call_operand.vmem [shape: f32[2,8,4,100], index: 10, kind: output, shape index: {0}]   ;;  %s2178_s11 = inlined_call_operand.vmem [shape: f32[2,8,4,1], index: 11, kind: output, shape index: {1}]   ;;  %s2179_s12 = inlined_call_operand.vmem [shape: f32[2,8,4,1], index: 12, kind: output, shape index: {2}]  }
   0x1   :  { %2192 = sst [smem:[#allocation2_spill]] %s2167_s0  ;;  %s1882_s23 = smov 0  }
   0x2   :  { %2193 = sst [smem:[#allocation3_spill]] %s2168_s1  ;;  %s1884_s24 = smov 0  }
   0x3   :  { %2194 = sst [smem:[#allocation4_spill]] %s2170_s3  ;;  %s1886_s25 = smov 0  }
   0x4 LB: > { %s32_s26 = sadd.s32 1, %s1791_s23  ;;  %s35_s27 = sadd.s32 1, %s1795_s24  ;;  %s1799_s25 = sphi %s1886_s25, %s23_s25   ;;  %s1795_s24 = sphi %s1884_s24, %s2207_s24   ;;  %s1791_s23 = sphi %s1882_s23, %s2206_s23   ;;  %s1787_s22 = sphi %s1880_s22, %s2205_s22   ;;  %s1783_s21 = sphi %s1878_s21, %s2204_s21  }
   0x5   : > { %p33_p0 = scmp.ge.s32.totalorder %s32_s26, 8  ;;  %p1573_p1 = scmp.ge.s32.totalorder %s1799_s25, 1 }
   0x6   : > { %p481_p2 = scmp.lt.s32.totalorder %s1799_s25, 17 }
   0x7   : > { %s2209_s26 = smov (%p33_p0, %s32_s26), 0  ;;  %s2211_s27 = smov (!%p33_p0, %s35_s27), %s1795_s24 }
   0x8   : > { %p482_p3 = pnand %p1573_p1, %p481_p2  ;;  %p37_p4 = scmp.ge.s32.totalorder %s2211_s27, 2 }
   0x9   : > { %p589_p5 = scmp.lt.s32.totalorder (!%p482_p3), %s1787_s22, 1  ;;  %p591_p6 = scmp.lt.s32.totalorder (!%p482_p3), %s1783_s21, 9  ;;  %v683_v0 = vlaneseq (!%p482_p3)  ;;  %v1801_v1 = vmov (!%p482_p3), 1983009808   ;;  %v1802_v6 = vmov (!%p482_p3), 0.0   ;;  %vm1810_vm0 = vmmov (!%p482_p3), 0  }
   0xa   : > { %s2213_s27 = smov (%p37_p4, %s2211_s27), 0  ;;  %485 = sbr.rel (%p482_p3) target bundleno = 604 (0x25c), region = 60 }
   0xb   : > { %v681_v2 = vunpack.c.l.s4 (!%p482_p3), %v1801_v1  ;;  %v684_v3 = vshrl.u32 (!%p482_p3), %v683_v0, 7  ;;  %1623 = vmatprep.subr.bf16.mxu1 (!%p482_p3), %v1802_v6  ;;  %1653 = vmatprep.subr.bf16.mxu0 (!%p482_p3), %v1802_v6  ;;  %s2195_s0 = sld [smem:[#allocation2_spill]] (!%p482_p3)  ;;  %s2196_s3 = sld [smem:[#allocation4_spill]] (!%p482_p3)  ;;  %v1812_v43 = vmov (!%p482_p3), 0   ;;  %v670_v44 = vld [vmem:[%s2175_s8] sm:$0xf] (!%p482_p3) }
   0xc   : > { %s597_s20 = sadd.s32 (!%p482_p3), 1, %s1783_s21  ;;  %s2184_s14 = smov (!%p482_p3), 118   ;;  %1629 = vmatprep.mubr.msk.bf16.mxu1 (!%p482_p3), %vm1810_vm0, %v1802_v6  ;;  %1659 = vmatprep.mubr.msk.bf16.mxu0 (!%p482_p3), %vm1810_vm0, %v1802_v6  ;;  %vm712_vm1 = vcmask (!%p482_p3), 1041408   ;;  %vm716_vm2 = vcmask (!%p482_p3), 1043456   ;;  %vm719_vm3 = vcmask (!%p482_p3), 1045504   ;;  %vm732_vm4 = vcmask (!%p482_p3), 293888  }
   0xd   : > { %v682_v4 = vunpack.c.0.s8 (!%p482_p3), %v681_v2  ;;  %p600_p7 = scmp.lt.s32.totalorder (!%p482_p3), %s597_s20, 9  ;;  %s1807_s17 = smov (!%p482_p3), 116   ;;  %1754 = vset.pattern.permute.xlu0 (!%p482_p3), %v1812_v43  ;;  %vm1287_vm5 = vcmask (!%p482_p3), 814080   ;;  %vm1292_vm6 = vcmask (!%p482_p3), 3072  }
   0xe   : > { %s2197_s1 = sld [smem:[#allocation3_spill]] (!%p482_p3)  ;;  %p647_p9 = scmp.lt.s32.totalorder (!%p482_p3), %s1783_s21, 7 }
   0xf   : > { %v1918_v5 = vsub.s32 (!%p482_p3), %v682_v4, %v684_v3 }
  0x11   : > { %s2215_s22 = smov (!%p589_p5, %s1787_s22), 1  ;;  %s2217_s20 = smov (!%p600_p7, %s597_s20), 9 }
  0x12   : > { %s592_s28 = scalar_select %p591_p6, %s1783_s21, 9 }
  0x13   : > { %s1915_s29 = smul.u32 10, %s2215_s22 }
  0x15   : > { %s594_s30 = sadd.s32 %s1915_s29, %s592_s28  ;;  %s2182_s28 = smov 117  }
  0x16   : > { %s1574_s13 = sshll.u32 %s594_s30, 1  ;;  %s2180_s30 = smov 127  }
  0x17   : > { %s596_s16 = scalar_lea.vmem %s2195_s0, %s1574_s13  ;;  %s624_s19 = scalar_lea.vmem %s2196_s3, %s1574_s13 }
  0x18   : > { %v1928_v7 = vld [vmem:[%s596_s16] sm:$0x3]  ;;  %s1805_s13 = smov 126   ;;  %s603_s15 = sadd.s32 %s1915_s29, %s2217_s20 }
  0x19   : > { %v1930_v8 = vld [vmem:[%s624_s19] sm:$0x3]  ;;  %v693_v9 = vrot.slane %v1928_v7, %v1918_v5  ;;  %v679_v10 = vcombine.low %v1928_v7, %v1928_v7  ;;  %s1575_s16 = sshll.u32 %s603_s15, 1  ;;  %s2188_s0 = smov 108  }
  0x1a   : > { %v982_v11 = vcombine.low %v1930_v8, %v1930_v8  ;;  %v996_v15 = vrot.slane %v1930_v8, %v1918_v5  ;;  %s2198_s20 = smov 117   ;;  %s633_s18 = scalar_lea.vmem %s2171_s4, %s1575_s16 }
  0x1b   : > { %702 = vrot.lane.b32.xlu1 %v693_v9, %s2182_s28  ;;  %v686_v12 = vrot.slane %v679_v10, %v1918_v5  ;;  %v696_v14 = vcombine.low %v693_v9, %v693_v9  ;;  %s2190_s28 = smov 107   ;;  %v1970_v23 = vld [vmem:[%s633_s18] sm:$0x3]  ;;  %s2200_s19 = smov 118  }
  0x1c   : > { %v989_v13 = vrot.slane %v982_v11, %v1918_v5  ;;  %v999_v17 = vcombine.low %v996_v15, %v996_v15  ;;  %v1081_v25 = vcombine.low %v1970_v23, %v1970_v23  ;;  %v1095_v28 = vrot.slane %v1970_v23, %v1918_v5  ;;  %s2202_s3 = smov 108  }
  0x1d   : > { %694 = vrot.lane.b32.xlu0 %v686_v12, %s2180_s30  ;;  %v699_v16 = vcombine.low %v686_v12, %v686_v12 }
  0x1e   : > { %v1002_v18 = vcombine.low %v989_v13, %v989_v13  ;;  %v1088_v26 = vrot.slane %v1081_v25, %v1918_v5  ;;  %v1098_v29 = vcombine.low %v1095_v28, %v1095_v28 }
  0x1f   : > { %997 = vrot.lane.b32.xlu1 %v989_v13, %s2180_s30  ;;  %s605_s30 = scalar_lea.vmem %s2197_s1, %s1575_s16  ;;  %s2186_s16 = smov 106  }
  0x20   : > { %v1956_v19 = vld [vmem:[%s605_s30] sm:$0x3]  ;;  %s2199_s30 = smov 127   ;;  %v1101_v30 = vcombine.low %v1088_v26, %v1088_v26  ;;  %s2201_s1 = smov 107  }
  0x21   : > { %697 = vrot.lane.b32.xlu0 %v696_v14, %s1805_s13  ;;  %v782_v20 = vcombine.low %v1956_v19, %v1956_v19  ;;  %v796_v22 = vrot.slane %v1956_v19, %v1918_v5 }
  0x23   : > { %700 = vrot.lane.b32.xlu1 %v699_v16, %s2184_s14  ;;  %v789_v21 = vrot.slane %v782_v20, %v1918_v5  ;;  %v799_v24 = vcombine.low %v796_v22, %v796_v22 }
  0x25   : > { %1000 = vrot.lane.b32.xlu0 %v999_v17, %s1805_s13  ;;  %v802_v27 = vcombine.low %v789_v21, %v789_v21 }
  0x27   : > { %1003 = vrot.lane.b32.xlu1 %v1002_v18, %s2184_s14  ;;  %s607_s14 = sadd.s32 2, %s1783_s21  ;;  %s2221_s21 = smov (!%p647_p9, %s1783_s21), 7 }
  0x28   : > { %p610_p8 = scmp.lt.s32.totalorder %s607_s14, 9 }
  0x29   : > { %704 = vrot.lane.b32.xlu0 %v686_v12, %s1807_s17  ;;  %v731_v12 = vld [vmem:[%s2173_s6] sm:$0x3] }
  0x2a   : > { %s2219_s14 = smov (!%p610_p8, %s607_s14), 9 }
  0x2b   : > { %708 = vrot.lane.b32.xlu1 %v699_v16, %s2190_s28  ;;  %s613_s15 = sadd.s32 %s1915_s29, %s2219_s14 }
  0x2c   : > { %s1576_s18 = sshll.u32 %s613_s15, 1 }
  0x2d   : > { %706 = vrot.lane.b32.xlu0 %v696_v14, %s2188_s0  ;;  %s643_s15 = scalar_lea.vmem %s2172_s5, %s1576_s18 }
  0x2e   : > { %v2012_v35 = vld [vmem:[%s643_s15] sm:$0x3] }
  0x2f   : > { %1007 = vrot.lane.b32.xlu1 %v989_v13, %s1807_s17  ;;  %v1181_v37 = vcombine.low %v2012_v35, %v2012_v35  ;;  %v1195_v40 = vrot.slane %v2012_v35, %v1918_v5 }
  0x31   : > { %1005 = vrot.lane.b32.xlu0 %v996_v15, %s2198_s20  ;;  %v1188_v38 = vrot.slane %v1181_v37, %v1918_v5  ;;  %v1198_v41 = vcombine.low %v1195_v40, %v1195_v40 }
  0x33   : > { %1011 = vrot.lane.b32.xlu1 %v1002_v18, %s2190_s28  ;;  %s615_s28 = scalar_lea.vmem %s2169_s2, %s1576_s18  ;;  %v1201_v42 = vcombine.low %v1188_v38, %v1188_v38 }
  0x34   : > { %v1998_v31 = vld [vmem:[%s615_s28] sm:$0x3]  ;;  %s1580_s28 = sshll.u32 %s2215_s22, 3 }
  0x35   : > { %1009 = vrot.lane.b32.xlu0 %v999_v17, %s2188_s0  ;;  %v882_v32 = vcombine.low %v1998_v31, %v1998_v31  ;;  %v896_v34 = vrot.slane %v1998_v31, %v1918_v5  ;;  %s2203_s0 = smov 106   ;;  %v1031_v17 = vld [vmem:[%s2174_s7] sm:$0x3] }
  0x37   : > { %797 = vrot.lane.b32.xlu1 %v789_v21, %s2199_s30  ;;  %v889_v33 = vrot.slane %v882_v32, %v1918_v5  ;;  %v899_v36 = vcombine.low %v896_v34, %v896_v34 }
  0x39   : > { %710 = vrot.lane.b32.xlu0 %v693_v9, %s2186_s16  ;;  %v902_v39 = vcombine.low %v889_v33, %v889_v33 }
  0x3b   : > { %800 = vrot.lane.b32.xlu1 %v799_v24, %s1805_s13 }
  0x3d   : > { %1013 = vrot.lane.b32.xlu0 %v996_v15, %s2186_s16 }
  0x3f   : > { %1096 = vrot.lane.b32.xlu1 %v1088_v26, %s2199_s30 }
  0x41   : > { %803 = vrot.lane.b32.xlu0 %v802_v27, %s2200_s19 }
  0x43   : > { %805 = vrot.lane.b32.xlu1 %v796_v22, %s2198_s20 }
  0x45   : > { %1099 = vrot.lane.b32.xlu0 %v1098_v29, %s1805_s13 }
  0x47   : > { %1102 = vrot.lane.b32.xlu1 %v1101_v30, %s2200_s19 }
  0x49   : > { %807 = vrot.lane.b32.xlu0 %v789_v21, %s1807_s17 }
  0x4b   : > { %811 = vrot.lane.b32.xlu1 %v802_v27, %s2201_s1 }
  0x4d   : > { %809 = vrot.lane.b32.xlu0 %v799_v24, %s2202_s3 }
  0x4f   : > { %1106 = vrot.lane.b32.xlu1 %v1088_v26, %s1807_s17 }
  0x51   : > { %1104 = vrot.lane.b32.xlu0 %v1095_v28, %s2198_s20 }
  0x53   : > { %1110 = vrot.lane.b32.xlu1 %v1101_v30, %s2201_s1 }
  0x55   : > { %1108 = vrot.lane.b32.xlu0 %v1098_v29, %s2202_s3 }
  0x57   : > { %897 = vrot.lane.b32.xlu1 %v889_v33, %s2199_s30 }
  0x59   : > { %813 = vrot.lane.b32.xlu0 %v796_v22, %s2203_s0 }
  0x5b   : > { %900 = vrot.lane.b32.xlu1 %v899_v36, %s1805_s13 }
  0x5d   : > { %1112 = vrot.lane.b32.xlu0 %v1095_v28, %s2203_s0 }
  0x5f   : > { %1196 = vrot.lane.b32.xlu1 %v1188_v38, %s2199_s30 }
  0x61   : > { %903 = vrot.lane.b32.xlu0 %v902_v39, %s2200_s19 }
  0x63   : > { %905 = vrot.lane.b32.xlu1 %v896_v34, %s2198_s20 }
  0x65   : > { %1199 = vrot.lane.b32.xlu0 %v1198_v41, %s1805_s13  ;;  %s650_s13 = sadd.s32 %s1580_s28, %s2221_s21 }
  0x67   : > { %1202 = vrot.lane.b32.xlu1 %v1201_v42, %s2200_s19 }
  0x69   : > { %907 = vrot.lane.b32.xlu0 %v889_v33, %s1807_s17 }
  0x6b   : > { %911 = vrot.lane.b32.xlu1 %v902_v39, %s2201_s1 }
  0x6d   : > { %909 = vrot.lane.b32.xlu0 %v899_v36, %s2202_s3 }
  0x6f   : > { %1206 = vrot.lane.b32.xlu1 %v1188_v38, %s1807_s17 }
  0x71   : > { %1204 = vrot.lane.b32.xlu0 %v1195_v40, %s2198_s20 }
  0x73   : > { %1210 = vrot.lane.b32.xlu1 %v1201_v42, %s2201_s1  ;;  %s1581_s1 = sshll.u32 %s650_s13, 2 }
  0x74   : > { %s652_s22 = scalar_lea.vmem %s2177_s10, %s1581_s1  ;;  %s660_s19 = scalar_lea.vmem %s2178_s11, %s1581_s1 }
  0x75   : > { %1208 = vrot.lane.b32.xlu0 %v1198_v41, %s2202_s3  ;;  %s668_s14 = scalar_lea.vmem %s2179_s12, %s1581_s1 }
  0x77   : > { %1212 = vrot.lane.b32.xlu1 %v1195_v40, %s2203_s0 }
  0x79   : > { %913 = vrot.lane.b32.xlu0 %v896_v34, %s2203_s0 }
  0x7d   : > { %673 = vperm.xlu0 %1754, %v670_v44  }
  0x8d   : > { %v703_v45 = vpop.permute.xlu1 %702 }
  0x8f   : > { %v695_v46 = vpop.permute.xlu0 %694 }
  0x90   : > { %v715_v48 = vsel %vm712_vm1, %v1928_v7, %v695_v46  ;;  %v1587_v46 = vld [vmem:[%s2173_s6 + $0x2] sm:$0x3] }
  0x91   : > { %v998_v47 = vpop.permute.xlu1 %997 }
  0x92   : > { %v1017_v51 = vsel %vm712_vm1, %v1930_v8, %v998_v47 }
  0x93   : > { %v698_v49 = vpop.permute.xlu0 %697 }
  0x94   : > { %v718_v50 = vsel %vm716_vm2, %v715_v48, %v698_v49 }
  0x95   : > { %v701_v52 = vpop.permute.xlu1 %700 }
  0x96   : > { %v721_v53 = vsel %vm719_vm3, %v718_v50, %v701_v52 }
  0x97   : > { %v1001_v54 = vpop.permute.xlu0 %1000  ;;  %1624 = vmatpush3.bf16.msra.mxu1 %v721_v53 }
  0x98   : > { %v1019_v55 = vsel %vm716_vm2, %v1017_v51, %v1001_v54  ;;  %1625 = vmatprep.subr.bf16.mxu1 %v1802_v6  ;;  %v1592_v51 = vld [vmem:[%s2174_s7 + $0x2] sm:$0x3] }
  0x99   : > { %v1004_v56 = vpop.permute.xlu1 %1003 }
  0x9a   : > { %v1021_v57 = vsel %vm719_vm3, %v1019_v55, %v1004_v56 }
  0x9b   : > { %v705_v58 = vpop.permute.xlu0 %704  ;;  %1654 = vmatpush3.bf16.msra.mxu0 %v1021_v57 }
  0x9c   : > { %1655 = vmatprep.subr.bf16.mxu0 %v1802_v6  ;;  %v725_v60 = vsel %vm712_vm1, %v703_v45, %v705_v58 }
  0x9d   : > { %v709_v59 = vpop.permute.xlu1 %708 }
  0x9f   : > { %v707_v61 = vpop.permute.xlu0 %706 }
  0xa0   : > { %v727_v62 = vsel %vm716_vm2, %v725_v60, %v707_v61 }
  0xa1   : > { %v1008_v63 = vpop.permute.xlu1 %1007  ;;  %v729_v0 = vsel %vm719_vm3, %v727_v62, %v709_v59 }
  0xa2   : > { %1626 = vmatpush3.bf16.msra.mxu1 %v729_v0 }
  0xa3   : > { %v1006_v1 = vpop.permute.xlu0 %1005  ;;  %1627 = vmatprep.subr.bf16.mxu1 %v1802_v6 }
  0xa4   : > { %v1025_v3 = vsel %vm712_vm1, %v1006_v1, %v1008_v63 }
  0xa5   : > { %v1012_v2 = vpop.permute.xlu1 %1011 }
  0xa7   : > { %v1010_v4 = vpop.permute.xlu0 %1009 }
  0xa8   : > { %v1027_v5 = vsel %vm716_vm2, %v1025_v3, %v1010_v4 }
  0xa9   : > { %v798_v7 = vpop.permute.xlu1 %797  ;;  %v1029_v8 = vsel %vm719_vm3, %v1027_v5, %v1012_v2 }
  0xaa   : > { %1656 = vmatpush3.bf16.msra.mxu0 %v1029_v8  ;;  %v817_v14 = vsel %vm712_vm1, %v1956_v19, %v798_v7 }
  0xab   : > { %v711_v9 = vpop.permute.xlu0 %710  ;;  %1657 = vmatprep.subr.bf16.mxu0 %v1802_v6 }
  0xac   : > { %v737_v10 = vsel %vm712_vm1, %v711_v9, 0 }
  0xad   : > { %1628 = vmatpush3.bf16.msra.mxu1 %v737_v10  ;;  %v801_v11 = vpop.permute.xlu1 %800 }
  0xae   : > { %1633 = vmatprep.subr.bf16.mxu1 %v1802_v6  ;;  %v819_v18 = vsel %vm716_vm2, %v817_v14, %v801_v11  ;;  %v1594_v14 = vld [vmem:[%s2174_s7 + $0x4] sm:$0x3] }
  0xaf   : > { %v1014_v13 = vpop.permute.xlu0 %1013 }
  0xb0   : > { %v1036_v15 = vsel %vm712_vm1, %v1014_v13, 0  ;;  %1630 = vmatmul.mubr.msk.bf16.vlgmr.msra.gmra.mrb[0].mxu1 %vm732_vm4, %v731_v12  ;;  %v1589_v13 = vld [vmem:[%s2173_s6 + $0x4] sm:$0x3] }
  0xb1   : > { %1658 = vmatpush3.bf16.msra.mxu0 %v1036_v15  ;;  %v1097_v16 = vpop.permute.xlu1 %1096  ;;  %1639 = vmatprep.mubr.msk.bf16.mxu1 %vm1810_vm0, %v1802_v6 }
  0xb2   : > { %1663 = vmatprep.subr.bf16.mxu0 %v1802_v6  ;;  %v1116_v21 = vsel %vm712_vm1, %v1970_v23, %v1097_v16 }
  0xb3   : > { %v804_v20 = vpop.permute.xlu0 %803 }
  0xb4   : > { %v821_v19 = vsel %vm719_vm3, %v819_v18, %v804_v20  ;;  %1660 = vmatmul.mubr.msk.bf16.vlgmr.msra.gmra.mrb[0].mxu0 %vm732_vm4, %v1031_v17  ;;  %v1596_v20 = vld [vmem:[%s2176_s9] ss:$0 sm:$0xff] }
  0xb5   : > { %1634 = vmatpush3.bf16.msra.mxu1 %v821_v19  ;;  %v806_v22 = vpop.permute.xlu1 %805  ;;  %1669 = vmatprep.mubr.msk.bf16.mxu0 %vm1810_vm0, %v1802_v6 }
  0xb6   : > { %1635 = vmatprep.subr.bf16.mxu1 %v1802_v6 }
  0xb7   : > { %v1100_v24 = vpop.permute.xlu0 %1099 }
  0xb8   : > { %v1118_v25 = vsel %vm716_vm2, %v1116_v21, %v1100_v24 }
  0xb9   : > { %v1103_v26 = vpop.permute.xlu1 %1102 }
  0xba   : > { %v1120_v27 = vsel %vm719_vm3, %v1118_v25, %v1103_v26 }
  0xbb   : > { %v808_v28 = vpop.permute.xlu0 %807  ;;  %1664 = vmatpush3.bf16.msra.mxu0 %v1120_v27 }
  0xbc   : > { %1665 = vmatprep.subr.bf16.mxu0 %v1802_v6  ;;  %v825_v23 = vsel %vm712_vm1, %v806_v22, %v808_v28 }
  0xbd   : > { %v812_v29 = vpop.permute.xlu1 %811 }
  0xbf   : > { %v810_v30 = vpop.permute.xlu0 %809 }
  0xc0   : > { %v827_v32 = vsel %vm716_vm2, %v825_v23, %v810_v30 }
  0xc1   : > { %v1107_v33 = vpop.permute.xlu1 %1106  ;;  %v829_v34 = vsel %vm719_vm3, %v827_v32, %v812_v29 }
  0xc2   : > { %1636 = vmatpush3.bf16.msra.mxu1 %v829_v34 }
  0xc3   : > { %v1105_v36 = vpop.permute.xlu0 %1104  ;;  %1637 = vmatprep.subr.bf16.mxu1 %v1802_v6 }
  0xc4   : > { %v1124_v38 = vsel %vm712_vm1, %v1105_v36, %v1107_v33 }
  0xc5   : > { %v1111_v37 = vpop.permute.xlu1 %1110 }
  0xc7   : > { %v1109_v39 = vpop.permute.xlu0 %1108 }
  0xc8   : > { %v1126_v40 = vsel %vm716_vm2, %v1124_v38, %v1109_v39 }
  0xc9   : > { %v898_v41 = vpop.permute.xlu1 %897  ;;  %v1128_v42 = vsel %vm719_vm3, %v1126_v40, %v1111_v37 }
  0xca   : > { %1666 = vmatpush3.bf16.msra.mxu0 %v1128_v42  ;;  %v917_v48 = vsel %vm712_vm1, %v1998_v31, %v898_v41 }
  0xcb   : > { %v814_v43 = vpop.permute.xlu0 %813  ;;  %1667 = vmatprep.subr.bf16.mxu0 %v1802_v6 }
  0xcc   : > { %v837_v44 = vsel %vm712_vm1, %v814_v43, 0 }
  0xcd   : > { %1638 = vmatpush3.bf16.msra.mxu1 %v837_v44  ;;  %v901_v45 = vpop.permute.xlu1 %900 }
  0xce   : > { %1643 = vmatprep.subr.bf16.mxu1 %v1802_v6  ;;  %v919_v52 = vsel %vm716_vm2, %v917_v48, %v901_v45 }
  0xcf   : > { %v1113_v47 = vpop.permute.xlu0 %1112 }
  0xd0   : > { %v1136_v49 = vsel %vm712_vm1, %v1113_v47, 0  ;;  %1640 = vmatmul.mubr.msk.bf16.vlgmr.msra.gmra.mrb[0].mxu1 %vm732_vm4, %v1587_v46 }
  0xd1   : > { %1668 = vmatpush3.bf16.msra.mxu0 %v1136_v49  ;;  %v1197_v50 = vpop.permute.xlu1 %1196  ;;  %1649 = vmatprep.mubr.msk.bf16.mxu1 %vm1810_vm0, %v1802_v6 }
  0xd2   : > { %1673 = vmatprep.subr.bf16.mxu0 %v1802_v6  ;;  %v1216_v54 = vsel %vm712_vm1, %v2012_v35, %v1197_v50 }
  0xd3   : > { %v904_v53 = vpop.permute.xlu0 %903 }
  0xd4   : > { %v921_v31 = vsel %vm719_vm3, %v919_v52, %v904_v53  ;;  %1670 = vmatmul.mubr.msk.bf16.vlgmr.msra.gmra.mrb[0].mxu0 %vm732_vm4, %v1592_v51 }
  0xd5   : > { %1644 = vmatpush3.bf16.msra.mxu1 %v921_v31  ;;  %v906_v55 = vpop.permute.xlu1 %905  ;;  %1679 = vmatprep.mubr.msk.bf16.mxu0 %vm1810_vm0, %v1802_v6 }
  0xd6   : > { %1645 = vmatprep.subr.bf16.mxu1 %v1802_v6 }
  0xd7   : > { %v1200_v56 = vpop.permute.xlu0 %1199 }
  0xd8   : > { %v1218_v57 = vsel %vm716_vm2, %v1216_v54, %v1200_v56 }
  0xd9   : > { %v1203_v58 = vpop.permute.xlu1 %1202 }
  0xda   : > { %v1220_v59 = vsel %vm719_vm3, %v1218_v57, %v1203_v58 }
  0xdb   : > { %v908_v60 = vpop.permute.xlu0 %907  ;;  %1674 = vmatpush3.bf16.msra.mxu0 %v1220_v59 }
  0xdc   : > { %1675 = vmatprep.subr.bf16.mxu0 %v1802_v6  ;;  %v925_v35 = vsel %vm712_vm1, %v906_v55, %v908_v60 }
  0xdd   : > { %v912_v61 = vpop.permute.xlu1 %911 }
  0xdf   : > { %v910_v62 = vpop.permute.xlu0 %909 }
  0xe0   : > { %v927_v63 = vsel %vm716_vm2, %v925_v35, %v910_v62 }
  0xe1   : > { %v929_v0 = vsel %vm719_vm3, %v927_v63, %v912_v61  ;;  %v1207_v1 = vpop.permute.xlu1 %1206 }
  0xe2   : > { %1646 = vmatpush3.bf16.msra.mxu1 %v929_v0 }
  0xe3   : > { %v1205_v2 = vpop.permute.xlu0 %1204  ;;  %1647 = vmatprep.subr.bf16.mxu1 %v1802_v6 }
  0xe4   : > { %v1224_v4 = vsel %vm712_vm1, %v1205_v2, %v1207_v1 }
  0xe5   : > { %v1211_v3 = vpop.permute.xlu1 %1210 }
  0xe7   : > { %v1209_v5 = vpop.permute.xlu0 %1208 }
  0xe8   : > { %v1226_v7 = vsel %vm716_vm2, %v1224_v4, %v1209_v5 }
  0xe9   : > { %v1228_v8 = vsel %vm719_vm3, %v1226_v7, %v1211_v3  ;;  %v1213_v9 = vpop.permute.xlu1 %1212 }
  0xea   : > { %1676 = vmatpush3.bf16.msra.mxu0 %v1228_v8  ;;  %v1236_v11 = vsel %vm712_vm1, %v1213_v9, 0 }
  0xeb   : > { %v914_v10 = vpop.permute.xlu0 %913  ;;  %1677 = vmatprep.subr.bf16.mxu0 %v1802_v6 }
  0xec   : > { %v937_v12 = vsel %vm712_vm1, %v914_v10, 0 }
  0xed   : > { %1648 = vmatpush3.bf16.msra.mxu1 %v937_v12 }
  0xee   : > { %1678 = vmatpush3.bf16.msra.mxu0 %v1236_v11 }
  0xf0   : > { %1650 = vmatmul.mubr.msk.bf16.vlgmr.msra.gmra.mrb[0].mxu1 %vm732_vm4, %v1589_v13 }
  0xf1   : > { %1680 = vmatmul.mubr.msk.bf16.vlgmr.msra.gmra.mrb[0].mxu0 %vm732_vm4, %v1594_v14 }
  0xfc   : > { %v674_v6 = vpop.permute.xlu0 %673 }
 0x1c3   : > { %v973_v15 = vpop.f32.mrb[0].mxu1 }
 0x1c4   : > { %v1683_v16 = vadd.f32 %v973_v15, %v674_v6  ;;  %v1651_v17 = vpop.f32.mrb[1].mxu1  ;;  %v1272_v18 = vpop.f32.mrb[0].mxu0 }
 0x1c5   : > { %v976_v19 = vpop.f32.mrb[2].mxu1  ;;  %v1681_v21 = vpop.f32.mrb[1].mxu0 }
 0x1c6   : > { %v1684_v22 = vadd.f32 %v1683_v16, %v1272_v18  ;;  %v1652_v24 = vpop.f32.mrb[3].mxu1  ;;  %v1275_v25 = vpop.f32.mrb[2].mxu0 }
 0x1c7   : > { %v1682_v26 = vpop.f32.mrb[3].mxu0 }
 0x1c8   : > { %v1286_v27 = vmul.f32 %v1684_v22, %v1596_v20 }
 0x1ca   : > { %v1289_v28 = vsel %vm1287_vm5, %v1286_v27, 0.0  ;;  %1288 = vst.msk [vmem:[%s652_s22] sm:$0xf] %vm1287_vm5, %v1286_v27  ;;  %v1294_v29 = vmul.f32 %v1286_v27, %v1286_v27 }
 0x1cb   : > { %1290 = vadd.xlane.f32.xlu1 %v1289_v28 }
 0x1cc   : > { %v1295_v23 = vsel %vm1287_vm5, %v1294_v29, 0.0 }
 0x1cd   : > { %1296 = vadd.xlane.f32.xlu0 %v1295_v23 }
 0x258   : > { %v1291_v30 = vpop.xlane.xlu1 %1290 }
 0x259   : > { %1293 = vst.msk [vmem:[%s660_s19] sm:$0xf] %vm1292_vm6, %v1291_v30 }
 0x25a   : > { %v1297_v32 = vpop.xlane.xlu0 %1296 }
 0x25b   : > { %1298 = vst.msk [vmem:[%s668_s14] sm:$0xf] %vm1292_vm6, %v1297_v32 }
 0x25c PF: > { %s23_s25 = sadd.s32 1, %s1799_s25   ;;  %s2204_s21 = smov %s1791_s23 }
 0x25d   : > { %p20_p10 = scmp.ge.s32.totalorder %s23_s25, 18   ;;  %s2205_s22 = smov %s1795_s24 }
 0x25e   : > { %s2206_s23 = smov %s2209_s26  ;;  %s2207_s24 = smov %s2213_s27 }
 0x25f   :  { %22 = sbr.rel (!%p20_p10) target bundleno = 4 (0x4), region = 133 }

// kernel: stage_decoder_forward.9
= control target key start
LH: loop header
LB: loop body
LE: loop exit
PB: predicated region body
PF: predicated region fallthrough
CT: control target
= control target key end

     0   :  { %s522_s15 = smov 0   ;;  %s524_s16 = smov 0   ;;  %s582_s0 = inlined_call_operand.vmem [shape: f32[2,8,4,100], index: 0, kind: input, shape index: {}]   ;;  %s583_s1 = inlined_call_operand.vmem [shape: f32[2,4,1], index: 1, kind: input, shape index: {}]   ;;  %s584_s2 = inlined_call_operand.vmem [shape: f32[2,4,1], index: 2, kind: input, shape index: {}]   ;;  %s585_s3 = inlined_call_operand.vmem [shape: f32[1,100], index: 3, kind: input, shape index: {}]   ;;  %s586_s4 = inlined_call_operand.vmem [shape: bf16[2,8,4,100], index: 4, kind: output, shape index: {}]  }
   0x1   :  { %s526_s17 = smov 0   ;;  %s528_s18 = smov 0  }
   0x2   :  { %s530_s19 = smov 0  }
   0x3 LB: > { %s23_s20 = sadd.s32 1, %s486_s17  ;;  %s26_s21 = sadd.s32 1, %s490_s18  ;;  %s494_s19 = sphi %s530_s19, %s14_s19   ;;  %s490_s18 = sphi %s528_s18, %s590_s18   ;;  %s486_s17 = sphi %s526_s17, %s589_s17   ;;  %s482_s16 = sphi %s524_s16, %s588_s16   ;;  %s478_s15 = sphi %s522_s15, %s587_s15  }
   0x4   : > { %p24_p0 = scmp.ge.s32.totalorder %s23_s20, 8  ;;  %p404_p1 = scmp.ge.s32.totalorder %s494_s19, 1 }
   0x5   : > { %p199_p2 = scmp.lt.s32.totalorder %s494_s19, 17 }
   0x6   : > { %s592_s20 = smov (%p24_p0, %s23_s20), 0  ;;  %s594_s21 = smov (!%p24_p0, %s26_s21), %s490_s18 }
   0x7   : > { %p200_p3 = pnand %p404_p1, %p199_p2  ;;  %p28_p4 = scmp.ge.s32.totalorder %s594_s21, 2 }
   0x8   : > { %p239_p5 = scmp.lt.s32.totalorder (!%p200_p3), %s482_s16, 1  ;;  %v496_v0 = vmov (!%p200_p3), 0   ;;  %p241_p6 = scmp.lt.s32.totalorder (!%p200_p3), %s478_s15, 7  ;;  %v411_v8 = vld [vmem:[%s585_s3] ss:$0 sm:$0xff] (!%p200_p3)  ;;  %vm288_vm0 = vcmask (!%p200_p3), 812032  }
   0x9   : > { %s596_s21 = smov (%p28_p4, %s594_s21), 0  ;;  %203 = sbr.rel (%p200_p3) target bundleno = 161 (0xa1), region = 36 }
   0xa   : > { %455 = vset.pattern.permute.xlu0 (!%p200_p3), %v496_v0 }
  0x10   : > { %s598_s16 = smov (!%p239_p5, %s482_s16), 1  ;;  %s600_s15 = smov (!%p241_p6, %s478_s15), 7 }
  0x11   : > { %s407_s22 = sshll.u32 %s598_s16, 2  ;;  %s405_s29 = sshll.u32 %s598_s16, 3 }
  0x12   : > { %s250_s25 = scalar_lea.vmem %s583_s1, %s407_s22  ;;  %s254_s28 = scalar_lea.vmem %s584_s2, %s407_s22 }
  0x13   : > { %v264_v1 = vld [vmem:[%s250_s25] sm:$0xf]  ;;  %s244_s30 = sadd.s32 %s405_s29, %s600_s15 }
  0x14   : > { %267 = vperm.xlu0 %455, %v264_v1   ;;  %v271_v2 = vld [vmem:[%s254_s28] sm:$0xf]  ;;  %s406_s5 = sshll.u32 %s244_s30, 2  ;;  %s410_s11 = sshll.u32 %s244_s30, 1 }
  0x15   : > { %s246_s8 = scalar_lea.vmem %s582_s0, %s406_s5  ;;  %s262_s14 = scalar_lea.vmem %s586_s4, %s410_s11 }
  0x16   : > { %v263_v4 = vld [vmem:[%s246_s8] sm:$0xf] }
  0x18   : > { %274 = vperm.xlu0 %455, %v271_v2  }
  0x93   : > { %v268_v3 = vpop.permute.xlu0 %267 }
  0x94   : > { %v270_v5 = vmul.f32 %v268_v3, %v263_v4 }
  0x97   : > { %v275_v6 = vpop.permute.xlu0 %274 }
  0x98   : > { %v277_v7 = vadd.f32 %v275_v6, %v270_v5 }
  0x9a   : > { %v278_v9 = vmax.f32 %v277_v7, 0.0 }
  0x9c   : > { %v286_v10 = vmul.f32 %v411_v8, %v278_v9 }
  0x9e   : > { %v287_v11 = vpack.c.bf16 %v286_v10, %v286_v10 }
  0xa0   : > { %289 = vst.msk [vmem:[%s262_s14] sm:$0x3] %vm288_vm0, %v287_v11 }
  0xa1 PF: > { %s14_s19 = sadd.s32 1, %s494_s19   ;;  %s587_s15 = smov %s486_s17 }
  0xa2   : > { %p11_p7 = scmp.ge.s32.totalorder %s14_s19, 18   ;;  %s588_s16 = smov %s490_s18 }
  0xa3   : > { %s589_s17 = smov %s592_s20  ;;  %s590_s18 = smov %s596_s21 }
  0xa4   :  { %13 = sbr.rel (!%p11_p7) target bundleno = 3 (0x3), region = 72 }

// kernel: stage_decoder_forward.10
= control target key start
LH: loop header
LB: loop body
LE: loop exit
PB: predicated region body
PF: predicated region fallthrough
CT: control target
= control target key end

     0   :  { %s1180_s24 = smov 0   ;;  %s1182_s25 = smov 0   ;;  %s1338_s0 = inlined_call_operand.vmem [shape: bf16[2,10,4,122], index: 0, kind: input, shape index: {}, may-alias: {0,1,2}]   ;;  %s1339_s1 = inlined_call_operand.vmem [shape: bf16[2,10,4,122], index: 1, kind: input, shape index: {}, may-alias: {0,1,2}]   ;;  %s1340_s2 = inlined_call_operand.vmem [shape: bf16[2,10,4,122], index: 2, kind: input, shape index: {}, may-alias: {0,1,2}]   ;;  %s1341_s3 = inlined_call_operand.vmem [shape: bf16[3,4,36], index: 3, kind: input, shape index: {}]   ;;  %s1342_s4 = inlined_call_operand.vmem [shape: f32[1,100], index: 4, kind: input, shape index: {}]   ;;  %s1343_s5 = inlined_call_operand.vmem [shape: f32[2,8,4,100], index: 5, kind: output, shape index: {0}]   ;;  %s1344_s6 = inlined_call_operand.vmem [shape: f32[2,8,4,1], index: 6, kind: output, shape index: {1}]   ;;  %s1345_s7 = inlined_call_operand.vmem [shape: f32[2,8,4,1], index: 7, kind: output, shape index: {2}]  }
   0x1   :  { %s1184_s26 = smov 0   ;;  %s1186_s27 = smov 0  }
   0x2   :  { %s1188_s28 = smov 0  }
   0x3 LB: > { %s27_s29 = sadd.s32 1, %s1119_s26  ;;  %s30_s30 = sadd.s32 1, %s1123_s27  ;;  %s1127_s28 = sphi %s1188_s28, %s18_s28   ;;  %s1123_s27 = sphi %s1186_s27, %s1349_s27   ;;  %s1119_s26 = sphi %s1184_s26, %s1348_s26   ;;  %s1115_s25 = sphi %s1182_s25, %s1347_s25   ;;  %s1111_s24 = sphi %s1180_s24, %s1346_s24  }
   0x4   : > { %p28_p0 = scmp.ge.s32.totalorder %s27_s29, 8  ;;  %p969_p1 = scmp.ge.s32.totalorder %s1127_s28, 1 }
   0x5   : > { %p303_p2 = scmp.lt.s32.totalorder %s1127_s28, 17 }
   0x6   : > { %s1351_s29 = smov (%p28_p0, %s27_s29), 0  ;;  %s1353_s30 = smov (!%p28_p0, %s30_s30), %s1123_s27 }
   0x7   : > { %p304_p3 = pnand %p969_p1, %p303_p2  ;;  %p32_p4 = scmp.ge.s32.totalorder %s1353_s30, 2 }
   0x8   : > { %p375_p5 = scmp.lt.s32.totalorder (!%p304_p3), %s1115_s25, 1  ;;  %p377_p6 = scmp.lt.s32.totalorder (!%p304_p3), %s1111_s24, 9  ;;  %v434_v0 = vlaneseq (!%p304_p3)  ;;  %v1129_v1 = vmov (!%p304_p3), 1983009808   ;;  %v1132_v12 = vmov (!%p304_p3), 0.0   ;;  %vm1137_vm0 = vmmov (!%p304_p3), 0  }
   0x9   : > { %s1355_s30 = smov (%p32_p4, %s1353_s30), 0  ;;  %307 = sbr.rel (%p304_p3) target bundleno = 553 (0x229), region = 40 }
   0xa   : > { %v432_v2 = vunpack.c.l.s4 (!%p304_p3), %v1129_v1  ;;  %v435_v3 = vshrl.u32 (!%p304_p3), %v434_v0, 7  ;;  %s393_s12 = sadd.s32 (!%p304_p3), 2, %s1111_s24  ;;  %s383_s16 = sadd.s32 (!%p304_p3), 1, %s1111_s24  ;;  %1009 = vmatprep.subr.bf16.mxu0 (!%p304_p3), %v1132_v12  ;;  %999 = vmatprep.subr.bf16.mxu1 (!%p304_p3), %v1132_v12  ;;  %vm463_vm1 = vcmask (!%p304_p3), 1041408   ;;  %vm467_vm2 = vcmask (!%p304_p3), 1043456  }
   0xb   : > { %p396_p7 = scmp.lt.s32.totalorder (!%p304_p3), %s393_s12, 9  ;;  %p386_p8 = scmp.lt.s32.totalorder (!%p304_p3), %s383_s16, 9  ;;  %1015 = vmatprep.mubr.msk.bf16.mxu0 (!%p304_p3), %vm1137_vm0, %v1132_v12  ;;  %1005 = vmatprep.mubr.msk.bf16.mxu1 (!%p304_p3), %vm1137_vm0, %v1132_v12  ;;  %vm470_vm3 = vcmask (!%p304_p3), 1045504   ;;  %v482_v48 = vld [vmem:[%s1341_s3] sm:$0x3] (!%p304_p3)  ;;  %vm536_vm4 = vcmask (!%p304_p3), 293888  }
   0xc   : > { %v433_v4 = vunpack.c.0.s8 (!%p304_p3), %v432_v2  ;;  %s1130_s17 = smov (!%p304_p3), 117   ;;  %s1131_s20 = smov (!%p304_p3), 127   ;;  %vm737_vm5 = vcmask (!%p304_p3), 814080   ;;  %vm742_vm6 = vcmask (!%p304_p3), 3072  }
   0xd   : > { %p405_p9 = scmp.lt.s32.totalorder (!%p304_p3), %s1111_s24, 7 }
   0xe   : > { %v436_v5 = vsub.s32 (!%p304_p3), %v433_v4, %v435_v3 }
  0x10   : > { %s1357_s25 = smov (!%p375_p5, %s1115_s25), 1  ;;  %s1359_s12 = smov (!%p396_p7, %s393_s12), 9 }
  0x11   : > { %s378_s8 = scalar_select %p377_p6, %s1111_s24, 9 }
  0x12   : > { %s1217_s9 = smul.u32 10, %s1357_s25  ;;  %s1361_s16 = smov (!%p386_p8, %s383_s16), 9 }
  0x13   : > { %s1363_s24 = smov (!%p405_p9, %s1111_s24), 7 }
  0x14   : > { %s380_s10 = sadd.s32 %s1217_s9, %s378_s8  ;;  %s399_s18 = sadd.s32 %s1217_s9, %s1359_s12 }
  0x15   : > { %s970_s11 = sshll.u32 %s380_s10, 1  ;;  %s972_s19 = sshll.u32 %s399_s18, 1 }
  0x16   : > { %s382_s15 = scalar_lea.vmem %s1338_s0, %s970_s11  ;;  %s401_s23 = scalar_lea.vmem %s1340_s2, %s972_s19 }
  0x17   : > { %v1224_v6 = vld [vmem:[%s382_s15] sm:$0x3]  ;;  %s1133_s8 = smov 106   ;;  %s389_s10 = sadd.s32 %s1217_s9, %s1361_s16 }
  0x18   : > { %v444_v7 = vrot.slane %v1224_v6, %v436_v5  ;;  %v430_v8 = vcombine.low %v1224_v6, %v1224_v6  ;;  %v1235_v11 = vld [vmem:[%s401_s23] sm:$0x3]  ;;  %s1134_s11 = smov 126   ;;  %s971_s12 = sshll.u32 %s389_s10, 1 }
  0x19   : > { %v631_v13 = vcombine.low %v1235_v11, %v1235_v11  ;;  %s391_s15 = scalar_lea.vmem %s1339_s1, %s971_s12  ;;  %s1135_s18 = smov 108   ;;  %v645_v19 = vrot.slane %v1235_v11, %v436_v5 }
  0x1a   : > { %453 = vrot.lane.b32.xlu1 %v444_v7, %s1130_s17  ;;  %v437_v9 = vrot.slane %v430_v8, %v436_v5  ;;  %v447_v10 = vcombine.low %v444_v7, %v444_v7  ;;  %v1247_v15 = vld [vmem:[%s391_s15] sm:$0x3]  ;;  %s1136_s19 = smov 116   ;;  %s1138_s9 = smov 118   ;;  %v979_v8 = vld [vmem:[%s1341_s3 + $0x2] sm:$0x3] }
  0x1b   : > { %v638_v14 = vrot.slane %v631_v13, %v436_v5  ;;  %v485_v16 = vcombine.low %v1247_v15, %v1247_v15  ;;  %v499_v20 = vrot.slane %v1247_v15, %v436_v5  ;;  %v648_v21 = vcombine.low %v645_v19, %v645_v19  ;;  %s1139_s16 = smov 107   ;;  %s973_s10 = sshll.u32 %s1357_s25, 3 }
  0x1c   : > { %445 = vrot.lane.b32.xlu0 %v437_v9, %s1131_s20  ;;  %v450_v18 = vcombine.low %v437_v9, %v437_v9 }
  0x1d   : > { %v492_v17 = vrot.slane %v485_v16, %v436_v5  ;;  %v502_v22 = vcombine.low %v499_v20, %v499_v20  ;;  %v651_v23 = vcombine.low %v638_v14, %v638_v14 }
  0x1e   : > { %461 = vrot.lane.b32.xlu1 %v444_v7, %s1133_s8 }
  0x1f   : > { %v505_v24 = vcombine.low %v492_v17, %v492_v17 }
  0x20   : > { %448 = vrot.lane.b32.xlu0 %v447_v10, %s1134_s11 }
  0x22   : > { %457 = vrot.lane.b32.xlu1 %v447_v10, %s1135_s18 }
  0x24   : > { %455 = vrot.lane.b32.xlu0 %v437_v9, %s1136_s19 }
  0x26   : > { %646 = vrot.lane.b32.xlu1 %v638_v14, %s1131_s20 }
  0x28   : > { %500 = vrot.lane.b32.xlu0 %v492_v17, %s1131_s20 }
  0x2a   : > { %451 = vrot.lane.b32.xlu1 %v450_v18, %s1138_s9 }
  0x2c   : > { %459 = vrot.lane.b32.xlu0 %v450_v18, %s1139_s16 }
  0x2e   : > { %649 = vrot.lane.b32.xlu1 %v648_v21, %s1134_s11 }
  0x30   : > { %503 = vrot.lane.b32.xlu0 %v502_v22, %s1134_s11  ;;  %s408_s11 = sadd.s32 %s973_s10, %s1363_s24 }
  0x31   : > { %s974_s12 = sshll.u32 %s408_s11, 2 }
  0x32   : > { %652 = vrot.lane.b32.xlu1 %v651_v23, %s1138_s9  ;;  %s426_s20 = scalar_lea.vmem %s1345_s7, %s974_s12 }
  0x34   : > { %506 = vrot.lane.b32.xlu0 %v505_v24, %s1138_s9  ;;  %s418_s9 = scalar_lea.vmem %s1344_s6, %s974_s12 }
  0x36   : > { %510 = vrot.lane.b32.xlu1 %v492_v17, %s1136_s19 }
  0x38   : > { %508 = vrot.lane.b32.xlu0 %v499_v20, %s1130_s17 }
  0x3a   : > { %656 = vrot.lane.b32.xlu1 %v638_v14, %s1136_s19  ;;  %s410_s19 = scalar_lea.vmem %s1343_s5, %s974_s12 }
  0x3c   : > { %654 = vrot.lane.b32.xlu0 %v645_v19, %s1130_s17 }
  0x3e   : > { %658 = vrot.lane.b32.xlu1 %v648_v21, %s1135_s18 }
  0x40   : > { %512 = vrot.lane.b32.xlu0 %v502_v22, %s1135_s18 }
  0x42   : > { %660 = vrot.lane.b32.xlu1 %v651_v23, %s1139_s16 }
  0x44   : > { %514 = vrot.lane.b32.xlu0 %v505_v24, %s1139_s16 }
  0x46   : > { %662 = vrot.lane.b32.xlu1 %v645_v19, %s1133_s8 }
  0x48   : > { %516 = vrot.lane.b32.xlu0 %v499_v20, %s1133_s8 }
  0x8c   : > { %v454_v25 = vpop.permute.xlu1 %453 }
  0x8e   : > { %v446_v26 = vpop.permute.xlu0 %445 }
  0x8f   : > { %v466_v33 = vsel %vm463_vm1, %v1224_v6, %v446_v26  ;;  %v982_v6 = vld [vmem:[%s1341_s3 + $0x4] sm:$0x3] }
  0x90   : > { %v462_v27 = vpop.permute.xlu1 %461 }
  0x91   : > { %v587_v44 = vsel %vm463_vm1, %v462_v27, 0 }
  0x92   : > { %v449_v28 = vpop.permute.xlu0 %448 }
  0x93   : > { %v469_v34 = vsel %vm467_vm2, %v466_v33, %v449_v28 }
  0x94   : > { %v458_v29 = vpop.permute.xlu1 %457 }
  0x96   : > { %v456_v30 = vpop.permute.xlu0 %455 }
  0x97   : > { %v476_v36 = vsel %vm463_vm1, %v454_v25, %v456_v30 }
  0x98   : > { %v647_v31 = vpop.permute.xlu1 %646  ;;  %v478_v40 = vsel %vm467_vm2, %v476_v36, %v458_v29 }
  0x99   : > { %v666_v49 = vsel %vm463_vm1, %v1235_v11, %v647_v31 }
  0x9a   : > { %v501_v32 = vpop.permute.xlu0 %500 }
  0x9b   : > { %v520_v45 = vsel %vm463_vm1, %v1247_v15, %v501_v32 }
  0x9c   : > { %v452_v35 = vpop.permute.xlu1 %451 }
  0x9d   : > { %v472_v37 = vsel %vm470_vm3, %v469_v34, %v452_v35 }
  0x9e   : > { %v460_v38 = vpop.permute.xlu0 %459  ;;  %1010 = vmatpush3.bf16.msra.mxu0 %v472_v37 }
  0x9f   : > { %1011 = vmatprep.subr.bf16.mxu0 %v1132_v12  ;;  %v480_v41 = vsel %vm470_vm3, %v478_v40, %v460_v38 }
  0xa0   : > { %v650_v39 = vpop.permute.xlu1 %649 }
  0xa1   : > { %v668_v51 = vsel %vm467_vm2, %v666_v49, %v650_v39 }
  0xa2   : > { %v504_v42 = vpop.permute.xlu0 %503  ;;  %1012 = vmatpush3.bf16.msra.mxu0 %v480_v41 }
  0xa3   : > { %1013 = vmatprep.subr.bf16.mxu0 %v1132_v12  ;;  %v522_v46 = vsel %vm467_vm2, %v520_v45, %v504_v42 }
  0xa4   : > { %v653_v43 = vpop.permute.xlu1 %652 }
  0xa5   : > { %v670_v53 = vsel %vm470_vm3, %v668_v51, %v653_v43 }
  0xa6   : > { %v507_v47 = vpop.permute.xlu0 %506  ;;  %1014 = vmatpush3.bf16.msra.mxu0 %v587_v44 }
  0xa7   : > { %v524_v50 = vsel %vm470_vm3, %v522_v46, %v507_v47  ;;  %1019 = vmatprep.subr.bf16.mxu0 %v1132_v12 }
  0xa8   : > { %1000 = vmatpush3.bf16.msra.mxu1 %v524_v50  ;;  %v511_v52 = vpop.permute.xlu1 %510 }
  0xa9   : > { %1016 = vmatmul.mubr.msk.bf16.vlgmr.msra.gmra.mrb[0].mxu0 %vm536_vm4, %v482_v48  ;;  %1001 = vmatprep.subr.bf16.mxu1 %v1132_v12 }
  0xaa   : > { %v509_v54 = vpop.permute.xlu0 %508  ;;  %1020 = vmatpush3.bf16.msra.mxu0 %v670_v53  ;;  %1025 = vmatprep.mubr.msk.bf16.mxu0 %vm1137_vm0, %v1132_v12 }
  0xab   : > { %1021 = vmatprep.subr.bf16.mxu0 %v1132_v12  ;;  %v528_v62 = vsel %vm463_vm1, %v509_v54, %v511_v52 }
  0xac   : > { %v657_v55 = vpop.permute.xlu1 %656 }
  0xae   : > { %v655_v56 = vpop.permute.xlu0 %654 }
  0xaf   : > { %v674_v58 = vsel %vm463_vm1, %v655_v56, %v657_v55 }
  0xb0   : > { %v659_v57 = vpop.permute.xlu1 %658 }
  0xb1   : > { %v676_v60 = vsel %vm467_vm2, %v674_v58, %v659_v57 }
  0xb2   : > { %v513_v59 = vpop.permute.xlu0 %512 }
  0xb3   : > { %v530_v0 = vsel %vm467_vm2, %v528_v62, %v513_v59 }
  0xb4   : > { %v661_v61 = vpop.permute.xlu1 %660 }
  0xb5   : > { %v678_v63 = vsel %vm470_vm3, %v676_v60, %v661_v61 }
  0xb6   : > { %v515_v1 = vpop.permute.xlu0 %514  ;;  %1022 = vmatpush3.bf16.msra.mxu0 %v678_v63 }
  0xb7   : > { %v532_v2 = vsel %vm470_vm3, %v530_v0, %v515_v1  ;;  %1023 = vmatprep.subr.bf16.mxu0 %v1132_v12 }
  0xb8   : > { %1002 = vmatpush3.bf16.msra.mxu1 %v532_v2  ;;  %v663_v3 = vpop.permute.xlu1 %662 }
  0xb9   : > { %v686_v4 = vsel %vm463_vm1, %v663_v3, 0  ;;  %1003 = vmatprep.subr.bf16.mxu1 %v1132_v12  ;;  %v984_v12 = vld [vmem:[%s1342_s4] ss:$0 sm:$0xff] }
  0xba   : > { %v517_v5 = vpop.permute.xlu0 %516  ;;  %1024 = vmatpush3.bf16.msra.mxu0 %v686_v4 }
  0xbb   : > { %v541_v7 = vsel %vm463_vm1, %v517_v5, 0 }
  0xbc   : > { %1004 = vmatpush3.bf16.msra.mxu1 %v541_v7 }
  0xbd   : > { %1026 = vmatmul.mubr.msk.bf16.vlgmr.msra.gmra.mrb[0].mxu0 %vm536_vm4, %v982_v6 }
  0xbf   : > { %1006 = vmatmul.mubr.msk.bf16.vlgmr.msra.gmra.mrb[0].mxu1 %vm536_vm4, %v979_v8 }
 0x190   : > { %v722_v9 = vpop.f32.mrb[0].mxu0 }
 0x191   : > { %v1027_v10 = vpop.f32.mrb[1].mxu0 }
 0x192   : > { %v577_v11 = vpop.f32.mrb[0].mxu1  ;;  %v725_v13 = vpop.f32.mrb[2].mxu0 }
 0x193   : > { %v1029_v14 = vadd.f32 %v722_v9, %v577_v11  ;;  %v1007_v15 = vpop.f32.mrb[1].mxu1  ;;  %v1028_v16 = vpop.f32.mrb[3].mxu0 }
 0x194   : > { %v580_v17 = vpop.f32.mrb[2].mxu1 }
 0x195   : > { %v736_v18 = vmul.f32 %v1029_v14, %v984_v12  ;;  %v1008_v19 = vpop.f32.mrb[3].mxu1 }
 0x197   : > { %v739_v20 = vsel %vm737_vm5, %v736_v18, 0.0  ;;  %738 = vst.msk [vmem:[%s410_s19] sm:$0xf] %vm737_vm5, %v736_v18  ;;  %v744_v21 = vmul.f32 %v736_v18, %v736_v18 }
 0x198   : > { %740 = vadd.xlane.f32.xlu0 %v739_v20 }
 0x199   : > { %v745_v22 = vsel %vm737_vm5, %v744_v21, 0.0 }
 0x19a   : > { %746 = vadd.xlane.f32.xlu1 %v745_v22 }
 0x225   : > { %v741_v23 = vpop.xlane.xlu0 %740 }
 0x226   : > { %743 = vst.msk [vmem:[%s418_s9] sm:$0xf] %vm742_vm6, %v741_v23 }
 0x227   : > { %v747_v24 = vpop.xlane.xlu1 %746 }
 0x228   : > { %748 = vst.msk [vmem:[%s426_s20] sm:$0xf] %vm742_vm6, %v747_v24 }
 0x229 PF: > { %s18_s28 = sadd.s32 1, %s1127_s28   ;;  %s1346_s24 = smov %s1119_s26 }
 0x22a   : > { %p15_p10 = scmp.ge.s32.totalorder %s18_s28, 18   ;;  %s1347_s25 = smov %s1123_s27 }
 0x22b   : > { %s1348_s26 = smov %s1351_s29  ;;  %s1349_s27 = smov %s1355_s30 }
 0x22c   :  { %17 = sbr.rel (!%p15_p10) target bundleno = 3 (0x3), region = 102 }

// kernel: stage_decoder_forward.11
= control target key start
LH: loop header
LB: loop body
LE: loop exit
PB: predicated region body
PF: predicated region fallthrough
CT: control target
= control target key end

     0   :  { %s524_s15 = smov 0   ;;  %s526_s16 = smov 0   ;;  %s584_s0 = inlined_call_operand.vmem [shape: f32[2,8,4,100], index: 0, kind: input, shape index: {}]   ;;  %s585_s1 = inlined_call_operand.vmem [shape: f32[2,4,1], index: 1, kind: input, shape index: {}]   ;;  %s586_s2 = inlined_call_operand.vmem [shape: f32[2,4,1], index: 2, kind: input, shape index: {}]   ;;  %s587_s3 = inlined_call_operand.vmem [shape: f32[1,100], index: 3, kind: input, shape index: {}]   ;;  %s588_s4 = inlined_call_operand.vmem [shape: bf16[2,8,4,100], index: 4, kind: output, shape index: {}]  }
   0x1   :  { %s528_s17 = smov 0   ;;  %s530_s18 = smov 0  }
   0x2   :  { %s532_s19 = smov 0  }
   0x3 LB: > { %s23_s20 = sadd.s32 1, %s488_s17  ;;  %s26_s21 = sadd.s32 1, %s492_s18  ;;  %s496_s19 = sphi %s532_s19, %s14_s19   ;;  %s492_s18 = sphi %s530_s18, %s592_s18   ;;  %s488_s17 = sphi %s528_s17, %s591_s17   ;;  %s484_s16 = sphi %s526_s16, %s590_s16   ;;  %s480_s15 = sphi %s524_s15, %s589_s15  }
   0x4   : > { %p24_p0 = scmp.ge.s32.totalorder %s23_s20, 8  ;;  %p406_p1 = scmp.ge.s32.totalorder %s496_s19, 1 }
   0x5   : > { %p199_p2 = scmp.lt.s32.totalorder %s496_s19, 17 }
   0x6   : > { %s594_s20 = smov (%p24_p0, %s23_s20), 0  ;;  %s596_s21 = smov (!%p24_p0, %s26_s21), %s492_s18 }
   0x7   : > { %p200_p3 = pnand %p406_p1, %p199_p2  ;;  %p28_p4 = scmp.ge.s32.totalorder %s596_s21, 2 }
   0x8   : > { %p239_p5 = scmp.lt.s32.totalorder (!%p200_p3), %s484_s16, 1  ;;  %v498_v0 = vmov (!%p200_p3), 0   ;;  %p241_p6 = scmp.lt.s32.totalorder (!%p200_p3), %s480_s15, 7  ;;  %v413_v8 = vld [vmem:[%s587_s3] ss:$0 sm:$0xff] (!%p200_p3)  ;;  %vm290_vm1 = vcmask (!%p200_p3), 812032  }
   0x9   : > { %s598_s21 = smov (%p28_p4, %s596_s21), 0  ;;  %203 = sbr.rel (%p200_p3) target bundleno = 162 (0xa2), region = 36 }
   0xa   : > { %457 = vset.pattern.permute.xlu0 (!%p200_p3), %v498_v0 }
  0x10   : > { %s600_s16 = smov (!%p239_p5, %s484_s16), 1  ;;  %s602_s15 = smov (!%p241_p6, %s480_s15), 7 }
  0x11   : > { %s409_s22 = sshll.u32 %s600_s16, 2  ;;  %s407_s29 = sshll.u32 %s600_s16, 3 }
  0x12   : > { %s250_s25 = scalar_lea.vmem %s585_s1, %s409_s22  ;;  %s254_s28 = scalar_lea.vmem %s586_s2, %s409_s22 }
  0x13   : > { %v264_v1 = vld [vmem:[%s250_s25] sm:$0xf]  ;;  %s244_s30 = sadd.s32 %s407_s29, %s602_s15 }
  0x14   : > { %267 = vperm.xlu0 %457, %v264_v1   ;;  %v271_v2 = vld [vmem:[%s254_s28] sm:$0xf]  ;;  %s408_s5 = sshll.u32 %s244_s30, 2  ;;  %s412_s11 = sshll.u32 %s244_s30, 1 }
  0x15   : > { %s246_s8 = scalar_lea.vmem %s584_s0, %s408_s5  ;;  %s262_s14 = scalar_lea.vmem %s588_s4, %s412_s11 }
  0x16   : > { %v263_v4 = vld [vmem:[%s246_s8] sm:$0xf] }
  0x18   : > { %274 = vperm.xlu0 %457, %v271_v2  }
  0x93   : > { %v268_v3 = vpop.permute.xlu0 %267 }
  0x94   : > { %v270_v5 = vmul.f32 %v268_v3, %v263_v4 }
  0x97   : > { %v275_v6 = vpop.permute.xlu0 %274 }
  0x98   : > { %v277_v7 = vadd.f32 %v275_v6, %v270_v5 }
  0x9a   : > { %vm278_vm0 = vcmp.ge.f32.partialorder %v277_v7, 0.0  ;;  %v279_v9 = vmul.f32 0.01, %v277_v7 }
  0x9c   : > { %v280_v10 = vsel %vm278_vm0, %v277_v7, %v279_v9 }
  0x9d   : > { %v288_v11 = vmul.f32 %v413_v8, %v280_v10 }
  0x9f   : > { %v289_v12 = vpack.c.bf16 %v288_v11, %v288_v11 }
  0xa1   : > { %291 = vst.msk [vmem:[%s262_s14] sm:$0x3] %vm290_vm1, %v289_v12 }
  0xa2 PF: > { %s14_s19 = sadd.s32 1, %s496_s19   ;;  %s589_s15 = smov %s488_s17 }
  0xa3   : > { %p11_p7 = scmp.ge.s32.totalorder %s14_s19, 18   ;;  %s590_s16 = smov %s492_s18 }
  0xa4   : > { %s591_s17 = smov %s594_s20  ;;  %s592_s18 = smov %s598_s21 }
  0xa5   :  { %13 = sbr.rel (!%p11_p7) target bundleno = 3 (0x3), region = 72 }

// kernel: stage_decoder_forward.13
= control target key start
LH: loop header
LB: loop body
LE: loop exit
PB: predicated region body
PF: predicated region fallthrough
CT: control target
= control target key end

     0   :  { %s609_s18 = smov 0   ;;  %s611_s19 = smov 0   ;;  %s672_s0 = inlined_call_operand.vmem [shape: f32[2,8,4,100], index: 0, kind: input, shape index: {}]   ;;  %s673_s1 = inlined_call_operand.vmem [shape: f32[2,4,1], index: 1, kind: input, shape index: {}]   ;;  %s674_s2 = inlined_call_operand.vmem [shape: f32[2,4,1], index: 2, kind: input, shape index: {}]   ;;  %s675_s3 = inlined_call_operand.vmem [shape: bf16[2,8,4,100], index: 3, kind: input, shape index: {}]   ;;  %s676_s4 = inlined_call_operand.vmem [shape: f32[1,100], index: 4, kind: input, shape index: {}]   ;;  %s677_s5 = inlined_call_operand.vmem [shape: f32[2,8,4,100], index: 5, kind: output, shape index: {}]  }
   0x1   :  { %s613_s20 = smov 0   ;;  %s615_s21 = smov 0  }
   0x2   :  { %s617_s22 = smov 0  }
   0x3 LB: > { %s24_s23 = sadd.s32 1, %s568_s20  ;;  %s27_s24 = sadd.s32 1, %s572_s21  ;;  %s576_s22 = sphi %s617_s22, %s15_s22   ;;  %s572_s21 = sphi %s615_s21, %s681_s21   ;;  %s568_s20 = sphi %s613_s20, %s680_s20   ;;  %s564_s19 = sphi %s611_s19, %s679_s19   ;;  %s560_s18 = sphi %s609_s18, %s678_s18  }
   0x4   : > { %p25_p0 = scmp.ge.s32.totalorder %s24_s23, 8  ;;  %p484_p1 = scmp.ge.s32.totalorder %s576_s22, 1 }
   0x5   : > { %p239_p2 = scmp.lt.s32.totalorder %s576_s22, 17 }
   0x6   : > { %s683_s23 = smov (%p25_p0, %s24_s23), 0  ;;  %s685_s24 = smov (!%p25_p0, %s27_s24), %s572_s21 }
   0x7   : > { %p240_p3 = pnand %p484_p1, %p239_p2  ;;  %p29_p4 = scmp.ge.s32.totalorder %s685_s24, 2 }
   0x8   : > { %p289_p5 = scmp.lt.s32.totalorder (!%p240_p3), %s564_s19, 1  ;;  %v578_v0 = vmov (!%p240_p3), 0   ;;  %p291_p6 = scmp.lt.s32.totalorder (!%p240_p3), %s560_s18, 7  ;;  %v493_v11 = vld [vmem:[%s676_s4] ss:$0 sm:$0xff] (!%p240_p3)  ;;  %vm350_vm1 = vcmask (!%p240_p3), 814080  }
   0x9   : > { %s687_s24 = smov (%p29_p4, %s685_s24), 0  ;;  %243 = sbr.rel (%p240_p3) target bundleno = 162 (0xa2), region = 40 }
   0xa   : > { %537 = vset.pattern.permute.xlu0 (!%p240_p3), %v578_v0 }
  0x10   : > { %s689_s19 = smov (!%p289_p5, %s564_s19), 1  ;;  %s691_s18 = smov (!%p291_p6, %s560_s18), 7 }
  0x11   : > { %s487_s25 = sshll.u32 %s689_s19, 2  ;;  %s485_s7 = sshll.u32 %s689_s19, 3 }
  0x12   : > { %s300_s28 = scalar_lea.vmem %s673_s1, %s487_s25  ;;  %s304_s6 = scalar_lea.vmem %s674_s2, %s487_s25 }
  0x13   : > { %v322_v1 = vld [vmem:[%s300_s28] sm:$0xf]  ;;  %s294_s8 = sadd.s32 %s485_s7, %s691_s18 }
  0x14   : > { %325 = vperm.xlu0 %537, %v322_v1   ;;  %v329_v2 = vld [vmem:[%s304_s6] sm:$0xf]  ;;  %s486_s9 = sshll.u32 %s294_s8, 2  ;;  %s490_s10 = sshll.u32 %s294_s8, 1 }
  0x15   : > { %s296_s13 = scalar_lea.vmem %s672_s0, %s486_s9  ;;  %s312_s16 = scalar_lea.vmem %s675_s3, %s490_s10 }
  0x16   : > { %v321_v4 = vld [vmem:[%s296_s13] sm:$0xf]  ;;  %s320_s26 = scalar_lea.vmem %s677_s5, %s486_s9 }
  0x17   : > { %v336_v5 = vld [vmem:[%s312_s16] sm:$0x3] }
  0x18   : > { %332 = vperm.xlu0 %537, %v329_v2   ;;  %v337_v7 = vunpack.c.l.bf16 %v336_v5 }
  0x93   : > { %v326_v3 = vpop.permute.xlu0 %325 }
  0x94   : > { %v328_v6 = vmul.f32 %v326_v3, %v321_v4 }
  0x97   : > { %v333_v8 = vpop.permute.xlu0 %332 }
  0x98   : > { %v335_v9 = vadd.f32 %v333_v8, %v328_v6 }
  0x9a   : > { %v338_v10 = vadd.f32 %v337_v7, %v335_v9 }
  0x9c   : > { %vm339_vm0 = vcmp.ge.f32.partialorder %v338_v10, 0.0  ;;  %v340_v12 = vmul.f32 0.01, %v338_v10 }
  0x9e   : > { %v341_v13 = vsel %vm339_vm0, %v338_v10, %v340_v12 }
  0x9f   : > { %v349_v14 = vmul.f32 %v493_v11, %v341_v13 }
  0xa1   : > { %351 = vst.msk [vmem:[%s320_s26] sm:$0xf] %vm350_vm1, %v349_v14 }
  0xa2 PF: > { %s15_s22 = sadd.s32 1, %s576_s22   ;;  %s678_s18 = smov %s568_s20 }
  0xa3   : > { %p12_p7 = scmp.ge.s32.totalorder %s15_s22, 18   ;;  %s679_s19 = smov %s572_s21 }
  0xa4   : > { %s680_s20 = smov %s683_s23  ;;  %s681_s21 = smov %s687_s24 }
  0xa5   :  { %14 = sbr.rel (!%p12_p7) target bundleno = 3 (0x3), region = 79 }

</bundles_post_ra>
